<compile_context>
chip_gen: v7x
topology: tpu7x:2x2x1
jax: 0.10.0
libtpu: 0.0.40
codegen_flags: <defaults>
</compile_context>

<pallas_src>
import functools
import math

import numpy as np
import jax
import jax.numpy as jnp
from jax import lax
from jax.experimental import pallas as pl
from jax.experimental.pallas import tpu as pltpu


# Fused gate layout over the 8H-wide gate vector (G = 8H):
#   slot 0: lanes [0,   2H) : input  gate i
#   slot 1: lanes [2H,  4H) : forget gate f
#   slot 2: lanes [4H,  6H) : output gate o
#   slot 3: lanes [6H,  8H) : cell   gate g
# Each 2H slot is [fwd | bwd], matching the fused state layout h/c = [fwd | bwd].
# Natural PyTorch gate order is [i, f, g, o]; map it to fused slots [i, f, o, g]
# so the three sigmoid-activated gates are contiguous (one EUP pass).
_GATE_SLOT = (0, 1, 3, 2)


def _scatter_gates(w, H, is_bwd):
    """Scatter natural [i|f|g|o] H-wide column blocks of `w` (R, 4H) into the
    gate-major, direction-minor fused layout (R, 8H)."""
    R = w.shape[0]
    out = jnp.zeros((R, 8 * H), jnp.float32)
    for n, slot in enumerate(_GATE_SLOT):
        dst = slot * 2 * H + (H if is_bwd else 0)
        out = out.at[:, dst:dst + H].set(w[:, n * H:(n + 1) * H])
    return out


def _fuse_layer_weights(layer, H):
    """Build fused-layout weights for one bidirectional layer.

    Returns:
      wif   : (D, 8H)  fwd input weights at fwd gate columns (zeros elsewhere)
      wib   : (D, 8H)  bwd input weights at bwd gate columns (zeros elsewhere)
      whh   : (2H, 8H) block-diagonal recurrent weights for the fused state
      b_all : (1, 8H)  combined biases (both directions)
    """
    wih_f, whh_f, b_f = layer["fwd"]          # (D,4H), (H,4H), (1,4H)
    wih_b, whh_b, b_b = layer["bwd"]
    wif = _scatter_gates(wih_f, H, False)
    wib = _scatter_gates(wih_b, H, True)
    whh = jnp.concatenate([_scatter_gates(whh_f, H, False),   # rows 0:H  (h_f)
                           _scatter_gates(whh_b, H, True)],   # rows H:2H (h_b)
                          axis=0)
    b_all = _scatter_gates(b_f, H, False) + _scatter_gates(b_b, H, True)
    return wif, wib, whh, b_all


# ----------------------------------------------------------------------------
# Pallas kernel: one bidirectional LSTM layer, grid over TIME CHUNKS.
# Fused state (h, c) of shape (B, 2H) lives in VMEM scratch across grid steps.
# ----------------------------------------------------------------------------
def _bilstm_layer_kernel(lens_ref, xf_ref, xb_ref, wif_ref, wib_ref, b_ref,
                         whh_ref,
                         yf_ref, yb_ref, hN_ref, cN_ref,
                         xgf_scr, xgb_scr, h_scr, c_scr,
                         *, Tc, H, D, Tp, n_chunks):
    chunk = pl.program_id(0)
    B = h_scr.shape[0]
    G = 8 * H

    @pl.when(chunk == 0)
    def _init():
        h_scr[...] = jnp.zeros_like(h_scr)
        c_scr[...] = jnp.zeros_like(c_scr)

    lens = lens_ref[...]                     # (B, 1) int32
    whh = whh_ref[...]                       # (2H, 8H), resident

    # ---- In-kernel input projection: one GEMM per direction per chunk. ----
    # xf covers forward times [chunk*Tc, chunk*Tc + Tc); xb covers the mirrored
    # chunk [(n-1-chunk)*Tc, ...) consumed by the (time-flipped) backward sweep.
    xf = xf_ref[...].reshape(Tc * B, D)
    xb = xb_ref[...].reshape(Tc * B, D)
    xgf = jnp.dot(xf, wif_ref[...], preferred_element_type=jnp.float32)
    xgb = jnp.dot(xb, wib_ref[...], preferred_element_type=jnp.float32)
    xgf_scr[...] = xgf.reshape(Tc, B, G) + b_ref[...]      # biases folded once
    xgb_scr[...] = xgb.reshape(Tc, B, G)

    t_base = chunk * Tc                       # global fwd time of local step 0
    lane = lax.broadcasted_iota(jnp.int32, (B, 2 * H), 1)
    is_fwd_lane = lane < H                    # state layout is [fwd | bwd]

    def step(tl, carry):
        h_prev, c_prev = carry
        t_f = t_base + tl                     # forward-direction global time
        t_b = (Tp - 1) - t_f                  # backward-direction global time

        # Recurrent half on the MXU (K=2H, N=8H) + precomputed input halves.
        z = (xgf_scr[tl] + xgb_scr[Tc - 1 - tl]
             + jnp.dot(h_prev, whh, preferred_element_type=jnp.float32))

        s_ifo = jax.nn.sigmoid(z[:, :6 * H])   # i|f|o in one full-width pass
        i_g = s_ifo[:, 0 * H:2 * H]
        f_g = s_ifo[:, 2 * H:4 * H]
        o_g = s_ifo[:, 4 * H:6 * H]
        g_g = jnp.tanh(z[:, 6 * H:8 * H])

        c_new = f_g * c_prev + i_g * g_g
        h_new = o_g * jnp.tanh(c_new)

        # Packed-sequence masking, per direction.
        t_cur = jnp.where(is_fwd_lane, t_f, t_b)    # (B, 2H) int32
        valid = t_cur < lens                        # lens (B,1) broadcasts

        # Per-step outputs: fwd half at local index tl, bwd half at the
        # mirrored index so y_bwd ends up in natural (forward) time order.
        yf_ref[tl] = jnp.where(t_f < lens, h_new[:, :H], 0.0)
        yb_ref[Tc - 1 - tl] = jnp.where(t_b < lens, h_new[:, H:], 0.0)

        return (jnp.where(valid, h_new, h_prev),
                jnp.where(valid, c_new, c_prev))

    h_fin, c_fin = lax.fori_loop(0, Tc, step, (h_scr[...], c_scr[...]),
                                 unroll=min(8, Tc))
    h_scr[...] = h_fin
    c_scr[...] = c_fin

    # Final states (already [fwd | bwd] = torch.cat(h[-2], h[-1])): last chunk only.
    @pl.when(chunk == n_chunks - 1)
    def _final():
        hN_ref[...] = h_fin
        cN_ref[...] = c_fin


def bilstm_layer(x, lens, wif, wib, b_all, whh, *, Tc):
    """One fused bidirectional LSTM layer over a (Tp, B, D) input.

    Tp must be a multiple of Tc (encoder_forward pads once up front).
    Returns y_fwd (Tp,B,H), y_bwd (Tp,B,H), h_n (B,2H), c_n (B,2H).
    """
    Tp, B, D = x.shape
    G = whh.shape[1]
    H = G // 8
    assert Tp % Tc == 0
    n_chunks = Tp // Tc

    fwd_map = lambda c: (c, 0, 0)
    bwd_map = lambda c: (n_chunks - 1 - c, 0, 0)

    kernel = functools.partial(_bilstm_layer_kernel, Tc=Tc, H=H, D=D,
                               Tp=Tp, n_chunks=n_chunks)

    y_f, y_b, h_n, c_n = pl.pallas_call(
        kernel,
        out_shape=(
            jax.ShapeDtypeStruct((Tp, B, H), jnp.float32),
            jax.ShapeDtypeStruct((Tp, B, H), jnp.float32),
            jax.ShapeDtypeStruct((B, 2 * H), jnp.float32),
            jax.ShapeDtypeStruct((B, 2 * H), jnp.float32),
        ),
        grid_spec=pltpu.PrefetchScalarGridSpec(
            num_scalar_prefetch=0,
            grid=(n_chunks,),
            in_specs=[
                pl.BlockSpec((B, 1), lambda c: (0, 0)),        # lengths
                pl.BlockSpec((Tc, B, D), fwd_map),             # x, fwd chunk
                pl.BlockSpec((Tc, B, D), bwd_map),             # x, bwd (mirror) chunk
                pl.BlockSpec((D, G), lambda c: (0, 0)),        # W_ih fwd (resident)
                pl.BlockSpec((D, G), lambda c: (0, 0)),        # W_ih bwd (resident)
                pl.BlockSpec((1, G), lambda c: (0, 0)),        # combined biases
                pl.BlockSpec((2 * H, G), lambda c: (0, 0)),    # block-diag W_hh
            ],
            out_specs=[
                pl.BlockSpec((Tc, B, H), fwd_map),             # y fwd
                pl.BlockSpec((Tc, B, H), bwd_map),             # y bwd
                pl.BlockSpec((B, 2 * H), lambda c: (0, 0)),    # final h
                pl.BlockSpec((B, 2 * H), lambda c: (0, 0)),    # final c
            ],
            scratch_shapes=[
                pltpu.VMEM((Tc, B, G), jnp.float32),           # fwd gate preacts
                pltpu.VMEM((Tc, B, G), jnp.float32),           # bwd gate preacts
                pltpu.VMEM((B, 2 * H), jnp.float32),           # h state
                pltpu.VMEM((B, 2 * H), jnp.float32),           # c state
            ],
        ),
        compiler_params=pltpu.CompilerParams(
            dimension_semantics=("arbitrary",)),               # recurrent axis
    )(lens, x, x, wif, wib, b_all, whh)
    return y_f, y_b, h_n, c_n


# ----------------------------------------------------------------------------
# Encoder forward (glue in plain JAX; all LSTM math in the Pallas kernel).
# ----------------------------------------------------------------------------
def encoder_forward(params, tokens, lengths_np, *, time_chunk=64):
    """tokens: (T, B) int32 ; lengths_np: host-side numpy int array (B,)."""
    lengths_np = np.asarray(lengths_np, np.int32)
    max_len = int(lengths_np.max())            # pad_packed_sequence trims here
    T_tok = tokens.shape[0]
    H = params["lstm"][0]["fwd"][1].shape[0]

    Tc = max(1, min(time_chunk, max_len))
    n_chunks = -(-max_len // Tc)
    Tp = n_chunks * Tc                         # padded length (chunk multiple)

    # Embedding lookup (gather) kept in plain JAX glue.
    embedded = jnp.take(params["embedding"], tokens, axis=0)    # (T, B, E)
    x = embedded[:min(Tp, T_tok)]
    if x.shape[0] < Tp:                        # pad once; trim once at the end
        x = jnp.pad(x, ((0, Tp - x.shape[0]), (0, 0), (0, 0)))
    lens = jnp.asarray(lengths_np, jnp.int32).reshape(-1, 1)    # (B, 1)

    h_n = c_n = None
    for layer in params["lstm"]:
        wif, wib, whh, b_all = None, None, None, None
        wif, wib, whh, b_all = _fuse_layer_weights(layer, H)
        y_f, y_b, h_n, c_n = bilstm_layer(x, lens, wif, wib, b_all, whh, Tc=Tc)
        x = jnp.concatenate([y_f, y_b], axis=-1)                # (Tp, B, 2H)

    outputs = x[:max_len]                                       # single trim
    return outputs, (h_n, c_n)


# ----------------------------------------------------------------------------
# Deterministic parameter initialization (mirrors nn.Embedding / nn.LSTM shapes)
# ----------------------------------------------------------------------------
def init_params(key, vocab_size, embedding_dim, hidden_size, num_layers):
    H = hidden_size
    bound = 1.0 / math.sqrt(H)
    key, k_emb = jax.random.split(key)
    params = {
        "embedding": jax.random.normal(k_emb, (vocab_size, embedding_dim),
                                       jnp.float32),
        "lstm": [],
    }
    for l in range(num_layers):
        in_dim = embedding_dim if l == 0 else 2 * H
        layer = {}
        for d in ("fwd", "bwd"):
            key, k1, k2, k3, k4 = jax.random.split(key, 5)
            wih_T = jax.random.uniform(k1, (in_dim, 4 * H), jnp.float32,
                                       -bound, bound)
            whh_T = jax.random.uniform(k2, (H, 4 * H), jnp.float32,
                                       -bound, bound)
            b_ih = jax.random.uniform(k3, (1, 4 * H), jnp.float32, -bound, bound)
            b_hh = jax.random.uniform(k4, (1, 4 * H), jnp.float32, -bound, bound)
            layer[d] = (wih_T, whh_T, b_ih + b_hh)
        params["lstm"].append(layer)
    return params


# ----------------------------------------------------------------------------
# Pure-JAX reference (same masked packed-LSTM semantics) for validation.
# Uses HIGHEST precision; the kernel uses default MXU precision (per review),
# hence the 2e-2 comparison tolerance.
# ----------------------------------------------------------------------------
def _ref_direction(x, lens, wih_T, whh_T, b, reverse):
    T, B, _ = x.shape
    H = whh_T.shape[0]
    hi = jax.lax.Precision.HIGHEST
    h = jnp.zeros((B, H), jnp.float32)
    c = jnp.zeros((B, H), jnp.float32)
    ys = [None] * T
    order = range(T - 1, -1, -1) if reverse else range(T)
    for t in order:
        z = (jnp.dot(x[t], wih_T, precision=hi)
             + jnp.dot(h, whh_T, precision=hi) + b)
        i_g = jax.nn.sigmoid(z[:, 0 * H:1 * H])
        f_g = jax.nn.sigmoid(z[:, 1 * H:2 * H])
        g_g = jnp.tanh(z[:, 2 * H:3 * H])
        o_g = jax.nn.sigmoid(z[:, 3 * H:4 * H])
        c_new = f_g * c + i_g * g_g
        h_new = o_g * jnp.tanh(c_new)
        valid = (t < lens)
        h = jnp.where(valid, h_new, h)
        c = jnp.where(valid, c_new, c)
        ys[t] = jnp.where(valid, h_new, 0.0)
    return jnp.stack(ys, axis=0), h, c


def _ref_encoder(params, tokens, lengths_np):
    lengths_np = np.asarray(lengths_np, np.int32)
    max_len = int(lengths_np.max())
    x = jnp.take(params["embedding"], tokens, axis=0)[:max_len]
    lens = jnp.asarray(lengths_np, jnp.int32).reshape(-1, 1)
    h_f = h_b = c_f = c_b = None
    for layer in params["lstm"]:
        y_f, h_f, c_f = _ref_direction(x, lens, *layer["fwd"], reverse=False)
        y_b, h_b, c_b = _ref_direction(x, lens, *layer["bwd"], reverse=True)
        x = jnp.concatenate([y_f, y_b], axis=-1)
    return x, (jnp.concatenate([h_f, h_b], axis=1),
               jnp.concatenate([c_f, c_b], axis=1))


if __name__ == "__main__":
    # Small shapes consistent with the module.  B=8 keeps (B, *) tiles
    # sublane-aligned; H=32 makes the fused gate width 8H = 256 lane-dense.
    VOCAB, EMB, HIDDEN, LAYERS = 50, 32, 32, 2
    T, B = 16, 8

    key = jax.random.PRNGKey(0)
    params = init_params(key, VOCAB, EMB, HIDDEN, LAYERS)

    key, k_tok = jax.random.split(key)
    tokens = jax.random.randint(k_tok, (T, B), 0, VOCAB, dtype=jnp.int32)
    lengths = np.array([16, 11, 7, 3, 16, 2, 13, 9], dtype=np.int32)  # max == T

    # time_chunk=8 -> 2 time chunks: exercises multi-chunk state carry, the
    # mirrored backward chunk indexing and the last-chunk final-state writes.
    outputs, (hidden, cell) = encoder_forward(params, tokens, lengths,
                                              time_chunk=8)
    jax.block_until_ready((outputs, hidden, cell))

    # Validate against the pure-JAX reference.
    ref_out, (ref_h, ref_c) = _ref_encoder(params, tokens, lengths)
    np.testing.assert_allclose(np.asarray(outputs), np.asarray(ref_out),
                               rtol=2e-2, atol=2e-2)
    np.testing.assert_allclose(np.asarray(hidden), np.asarray(ref_h),
                               rtol=2e-2, atol=2e-2)
    np.testing.assert_allclose(np.asarray(cell), np.asarray(ref_c),
                               rtol=2e-2, atol=2e-2)

    assert outputs.shape == (int(np.max(lengths)), B, 2 * HIDDEN)
    assert hidden.shape == (B, 2 * HIDDEN)
    assert cell.shape == (B, 2 * HIDDEN)

    print("KERNEL_OK")
</pallas_src>

<mosaic_0001>
module attributes {stable_mosaic.version = 11 : i64} {
  func.func @_bilstm_layer_kernel(%arg0: i32, %arg1: memref<8x1xi32, #tpu.memory_space<vmem>>, %arg2: memref<8x8x32xf32, #tpu.memory_space<vmem>>, %arg3: memref<8x8x32xf32, #tpu.memory_space<vmem>>, %arg4: memref<32x256xf32, #tpu.memory_space<vmem>>, %arg5: memref<32x256xf32, #tpu.memory_space<vmem>>, %arg6: memref<1x256xf32, #tpu.memory_space<vmem>>, %arg7: memref<64x256xf32, #tpu.memory_space<vmem>>, %arg8: memref<8x8x32xf32, #tpu.memory_space<vmem>>, %arg9: memref<8x8x32xf32, #tpu.memory_space<vmem>>, %arg10: memref<8x64xf32, #tpu.memory_space<vmem>>, %arg11: memref<8x64xf32, #tpu.memory_space<vmem>>, %arg12: memref<8x8x256xf32, #tpu.memory_space<vmem>>, %arg13: memref<8x8x256xf32, #tpu.memory_space<vmem>>, %arg14: memref<8x64xf32, #tpu.memory_space<vmem>>, %arg15: memref<8x64xf32, #tpu.memory_space<vmem>>) attributes {dimension_semantics = [#tpu.dimension_semantics<arbitrary>], iteration_bounds = array<i64: 2>, scalar_prefetch = 0 : i64, scratch_operands = 4 : i64, tpu.core_type = #tpu.core_type<tc>, window_params = [{pipeline_mode = #tpu.pipeline_mode<synchronous>, transform_indices = @transform_0, window_bounds = array<i64: 8, 1>}, {transform_indices = @transform_1, window_bounds = array<i64: 8, 8, 32>}, {transform_indices = @transform_2, window_bounds = array<i64: 8, 8, 32>}, {pipeline_mode = #tpu.pipeline_mode<synchronous>, transform_indices = @transform_3, window_bounds = array<i64: 32, 256>}, {pipeline_mode = #tpu.pipeline_mode<synchronous>, transform_indices = @transform_4, window_bounds = array<i64: 32, 256>}, {pipeline_mode = #tpu.pipeline_mode<synchronous>, transform_indices = @transform_5, window_bounds = array<i64: 1, 256>}, {pipeline_mode = #tpu.pipeline_mode<synchronous>, transform_indices = @transform_6, window_bounds = array<i64: 64, 256>}, {transform_indices = @transform_7, window_bounds = array<i64: 8, 8, 32>}, {transform_indices = @transform_8, window_bounds = array<i64: 8, 8, 32>}, {pipeline_mode = #tpu.pipeline_mode<synchronous>, transform_indices = @transform_9, window_bounds = array<i64: 8, 64>}, {pipeline_mode = #tpu.pipeline_mode<synchronous>, transform_indices = @transform_10, window_bounds = array<i64: 8, 64>}]} {
    %c0_i32 = arith.constant 0 : i32
    %0 = arith.cmpi eq, %arg0, %c0_i32 : i32
    %1 = arith.extui %0 : i1 to i32
    %c0_i32_0 = arith.constant 0 : i32
    %2 = arith.cmpi ne, %1, %c0_i32_0 : i32
    scf.if %2 {
      %cst_154 = arith.constant 0.000000e+00 : f32
      %496 = vector.broadcast %cst_154 : f32 to vector<8x64xf32>
      %c0_155 = arith.constant 0 : index
      %c0_156 = arith.constant 0 : index
      %497 = vector.load %arg14[%c0_155, %c0_156] : memref<8x64xf32, #tpu.memory_space<vmem>>, vector<8x64xf32>
      tpu.vector_store %arg14[%c0_155, %c0_156], %496 {strides = array<i32>} : memref<8x64xf32, #tpu.memory_space<vmem>>, vector<8x64xf32>,
      %cst_157 = arith.constant 0.000000e+00 : f32
      %498 = vector.broadcast %cst_157 : f32 to vector<8x64xf32>
      %c0_158 = arith.constant 0 : index
      %c0_159 = arith.constant 0 : index
      %499 = vector.load %arg15[%c0_158, %c0_159] : memref<8x64xf32, #tpu.memory_space<vmem>>, vector<8x64xf32>
      tpu.vector_store %arg15[%c0_158, %c0_159], %498 {strides = array<i32>} : memref<8x64xf32, #tpu.memory_space<vmem>>, vector<8x64xf32>,
    } else {
    }
    %c0 = arith.constant 0 : index
    %c0_1 = arith.constant 0 : index
    %3 = vector.load %arg1[%c0, %c0_1] : memref<8x1xi32, #tpu.memory_space<vmem>>, vector<8x1xi32>
    %c0_2 = arith.constant 0 : index
    %c0_3 = arith.constant 0 : index
    %4 = vector.load %arg7[%c0_2, %c0_3] : memref<64x256xf32, #tpu.memory_space<vmem>>, vector<64x256xf32>
    %c0_4 = arith.constant 0 : index
    %c0_5 = arith.constant 0 : index
    %c0_6 = arith.constant 0 : index
    %5 = vector.load %arg2[%c0_4, %c0_5, %c0_6] : memref<8x8x32xf32, #tpu.memory_space<vmem>>, vector<8x8x32xf32>
    %6 = vector.shape_cast %5 : vector<8x8x32xf32> to vector<64x32xf32>
    %c0_7 = arith.constant 0 : index
    %c0_8 = arith.constant 0 : index
    %c0_9 = arith.constant 0 : index
    %7 = vector.load %arg3[%c0_7, %c0_8, %c0_9] : memref<8x8x32xf32, #tpu.memory_space<vmem>>, vector<8x8x32xf32>
    %8 = vector.shape_cast %7 : vector<8x8x32xf32> to vector<64x32xf32>
    %c0_10 = arith.constant 0 : index
    %c0_11 = arith.constant 0 : index
    %9 = vector.load %arg4[%c0_10, %c0_11] : memref<32x256xf32, #tpu.memory_space<vmem>>, vector<32x256xf32>
    %cst = arith.constant dense<0.000000e+00> : vector<64x256xf32>
    %10 = tpu.matmul %6, %9, %cst {dimension_numbers = #tpu.dot_dimension_numbers<[1], [0], [0], [1], [0, 0, 1, 1], [], []>} : vector<64x32xf32>, vector<32x256xf32>, vector<64x256xf32> -> vector<64x256xf32>
    %c0_12 = arith.constant 0 : index
    %c0_13 = arith.constant 0 : index
    %11 = vector.load %arg5[%c0_12, %c0_13] : memref<32x256xf32, #tpu.memory_space<vmem>>, vector<32x256xf32>
    %cst_14 = arith.constant dense<0.000000e+00> : vector<64x256xf32>
    %12 = tpu.matmul %8, %11, %cst_14 {dimension_numbers = #tpu.dot_dimension_numbers<[1], [0], [0], [1], [0, 0, 1, 1], [], []>} : vector<64x32xf32>, vector<32x256xf32>, vector<64x256xf32> -> vector<64x256xf32>
    %13 = vector.shape_cast %10 : vector<64x256xf32> to vector<8x8x256xf32>
    %c0_15 = arith.constant 0 : index
    %c0_16 = arith.constant 0 : index
    %14 = vector.load %arg6[%c0_15, %c0_16] : memref<1x256xf32, #tpu.memory_space<vmem>>, vector<1x256xf32>
    %15 = vector.shape_cast %14 : vector<1x256xf32> to vector<1x1x256xf32>
    %16 = vector.broadcast %15 : vector<1x1x256xf32> to vector<8x8x256xf32>
    %17 = arith.addf %13, %16 : vector<8x8x256xf32>
    %c0_17 = arith.constant 0 : index
    %c0_18 = arith.constant 0 : index
    %c0_19 = arith.constant 0 : index
    %18 = vector.load %arg12[%c0_17, %c0_18, %c0_19] : memref<8x8x256xf32, #tpu.memory_space<vmem>>, vector<8x8x256xf32>
    tpu.vector_store %arg12[%c0_17, %c0_18, %c0_19], %17 {strides = array<i32>} : memref<8x8x256xf32, #tpu.memory_space<vmem>>, vector<8x8x256xf32>,
    %19 = vector.shape_cast %12 : vector<64x256xf32> to vector<8x8x256xf32>
    %c0_20 = arith.constant 0 : index
    %c0_21 = arith.constant 0 : index
    %c0_22 = arith.constant 0 : index
    %20 = vector.load %arg13[%c0_20, %c0_21, %c0_22] : memref<8x8x256xf32, #tpu.memory_space<vmem>>, vector<8x8x256xf32>
    tpu.vector_store %arg13[%c0_20, %c0_21, %c0_22], %19 {strides = array<i32>} : memref<8x8x256xf32, #tpu.memory_space<vmem>>, vector<8x8x256xf32>,
    %c8_i32 = arith.constant 8 : i32
    %21 = arith.muli %arg0, %c8_i32 : i32
    %22 = tpu.iota {dimensions = array<i32: 1>} : vector<8x64xi32>
    %c32_i32 = arith.constant 32 : i32
    %23 = vector.broadcast %c32_i32 : i32 to vector<8x64xi32>
    %24 = arith.cmpi slt, %22, %23 : vector<8x64xi32>
    %c0_23 = arith.constant 0 : index
    %c0_24 = arith.constant 0 : index
    %25 = vector.load %arg14[%c0_23, %c0_24] : memref<8x64xf32, #tpu.memory_space<vmem>>, vector<8x64xf32>
    %c0_25 = arith.constant 0 : index
    %c0_26 = arith.constant 0 : index
    %26 = vector.load %arg15[%c0_25, %c0_26] : memref<8x64xf32, #tpu.memory_space<vmem>>, vector<8x64xf32>
    %c0_i32_27 = arith.constant 0 : i32
    %27 = arith.addi %21, %c0_i32_27 : i32
    %c15_i32 = arith.constant 15 : i32
    %28 = arith.subi %c15_i32, %27 : i32
    %29 = arith.index_cast %c0_i32_27 : i32 to index
    %c0_28 = arith.constant 0 : index
    %c0_29 = arith.constant 0 : index
    %30 = vector.load %arg12[%29, %c0_28, %c0_29] : memref<8x8x256xf32, #tpu.memory_space<vmem>>, vector<1x8x256xf32>
    %31 = vector.shape_cast %30 : vector<1x8x256xf32> to vector<8x256xf32>
    %c7_i32 = arith.constant 7 : i32
    %32 = arith.subi %c7_i32, %c0_i32_27 : i32
    %33 = arith.index_cast %32 : i32 to index
    %c0_30 = arith.constant 0 : index
    %c0_31 = arith.constant 0 : index
    %34 = vector.load %arg13[%33, %c0_30, %c0_31] : memref<8x8x256xf32, #tpu.memory_space<vmem>>, vector<1x8x256xf32>
    %35 = vector.shape_cast %34 : vector<1x8x256xf32> to vector<8x256xf32>
    %36 = arith.addf %31, %35 : vector<8x256xf32>
    %cst_32 = arith.constant dense<0.000000e+00> : vector<8x256xf32>
    %37 = tpu.matmul %25, %4, %cst_32 {dimension_numbers = #tpu.dot_dimension_numbers<[1], [0], [0], [1], [0, 0, 1, 1], [], []>} : vector<8x64xf32>, vector<64x256xf32>, vector<8x256xf32> -> vector<8x256xf32>
    %38 = arith.addf %36, %37 : vector<8x256xf32>
    %39 = vector.extract_strided_slice %38 {offsets = [0, 0], sizes = [8, 192], strides = [1, 1]} : vector<8x256xf32> to vector<8x192xf32>
    %40 = arith.negf %39 : vector<8x192xf32>
    %41 = math.exp %40 : vector<8x192xf32>
    %cst_33 = arith.constant 1.000000e+00 : f32
    %42 = vector.broadcast %cst_33 : f32 to vector<8x192xf32>
    %43 = arith.addf %42, %41 : vector<8x192xf32>
    %44 = arith.divf %42, %43 : vector<8x192xf32>
    %45 = vector.extract_strided_slice %44 {offsets = [0, 0], sizes = [8, 64], strides = [1, 1]} : vector<8x192xf32> to vector<8x64xf32>
    %46 = vector.extract_strided_slice %44 {offsets = [0, 64], sizes = [8, 64], strides = [1, 1]} : vector<8x192xf32> to vector<8x64xf32>
    %47 = vector.extract_strided_slice %44 {offsets = [0, 128], sizes = [8, 64], strides = [1, 1]} : vector<8x192xf32> to vector<8x64xf32>
    %48 = vector.extract_strided_slice %38 {offsets = [0, 192], sizes = [8, 64], strides = [1, 1]} : vector<8x256xf32> to vector<8x64xf32>
    %49 = math.tanh %48 : vector<8x64xf32>
    %50 = arith.mulf %46, %26 : vector<8x64xf32>
    %51 = arith.mulf %45, %49 : vector<8x64xf32>
    %52 = arith.addf %50, %51 : vector<8x64xf32>
    %53 = math.tanh %52 : vector<8x64xf32>
    %54 = arith.mulf %47, %53 : vector<8x64xf32>
    %55 = vector.broadcast %27 : i32 to vector<8x64xi32>
    %56 = vector.broadcast %28 : i32 to vector<8x64xi32>
    %57 = arith.select %24, %55, %56 : vector<8x64xi1>, vector<8x64xi32>
    %58 = vector.broadcast %3 : vector<8x1xi32> to vector<8x64xi32>
    %59 = arith.cmpi slt, %57, %58 : vector<8x64xi32>
    %60 = vector.broadcast %27 : i32 to vector<8x1xi32>
    %61 = arith.cmpi slt, %60, %3 : vector<8x1xi32>
    %62 = vector.extract_strided_slice %54 {offsets = [0, 0], sizes = [8, 32], strides = [1, 1]} : vector<8x64xf32> to vector<8x32xf32>
    %cst_34 = arith.constant 0.000000e+00 : f32
    %63 = vector.shape_cast %61 : vector<8x1xi1> to vector<8x1xi1>
    %64 = vector.broadcast %63 : vector<8x1xi1> to vector<8x32xi1>
    %65 = vector.broadcast %cst_34 : f32 to vector<8x32xf32>
    %66 = arith.select %64, %62, %65 : vector<8x32xi1>, vector<8x32xf32>
    %67 = arith.index_cast %c0_i32_27 : i32 to index
    %c0_35 = arith.constant 0 : index
    %c0_36 = arith.constant 0 : index
    %68 = vector.load %arg8[%67, %c0_35, %c0_36] : memref<8x8x32xf32, #tpu.memory_space<vmem>>, vector<1x8x32xf32>
    %69 = vector.shape_cast %68 : vector<1x8x32xf32> to vector<8x32xf32>
    %70 = vector.shape_cast %66 : vector<8x32xf32> to vector<1x8x32xf32>
    tpu.vector_store %arg8[%67, %c0_35, %c0_36], %70 {strides = array<i32>} : memref<8x8x32xf32, #tpu.memory_space<vmem>>, vector<1x8x32xf32>,
    %71 = vector.broadcast %28 : i32 to vector<8x1xi32>
    %72 = arith.cmpi slt, %71, %3 : vector<8x1xi32>
    %73 = vector.extract_strided_slice %54 {offsets = [0, 32], sizes = [8, 32], strides = [1, 1]} : vector<8x64xf32> to vector<8x32xf32>
    %cst_37 = arith.constant 0.000000e+00 : f32
    %74 = vector.shape_cast %72 : vector<8x1xi1> to vector<8x1xi1>
    %75 = vector.broadcast %74 : vector<8x1xi1> to vector<8x32xi1>
    %76 = vector.broadcast %cst_37 : f32 to vector<8x32xf32>
    %77 = arith.select %75, %73, %76 : vector<8x32xi1>, vector<8x32xf32>
    %c7_i32_38 = arith.constant 7 : i32
    %78 = arith.subi %c7_i32_38, %c0_i32_27 : i32
    %79 = arith.index_cast %78 : i32 to index
    %c0_39 = arith.constant 0 : index
    %c0_40 = arith.constant 0 : index
    %80 = vector.load %arg9[%79, %c0_39, %c0_40] : memref<8x8x32xf32, #tpu.memory_space<vmem>>, vector<1x8x32xf32>
    %81 = vector.shape_cast %80 : vector<1x8x32xf32> to vector<8x32xf32>
    %82 = vector.shape_cast %77 : vector<8x32xf32> to vector<1x8x32xf32>
    tpu.vector_store %arg9[%79, %c0_39, %c0_40], %82 {strides = array<i32>} : memref<8x8x32xf32, #tpu.memory_space<vmem>>, vector<1x8x32xf32>,
    %83 = arith.select %59, %54, %25 : vector<8x64xi1>, vector<8x64xf32>
    %84 = arith.select %59, %52, %26 : vector<8x64xi1>, vector<8x64xf32>
    %c1_i32 = arith.constant 1 : i32
    %85 = arith.addi %21, %c1_i32 : i32
    %c15_i32_41 = arith.constant 15 : i32
    %86 = arith.subi %c15_i32_41, %85 : i32
    %87 = arith.index_cast %c1_i32 : i32 to index
    %c0_42 = arith.constant 0 : index
    %c0_43 = arith.constant 0 : index
    %88 = vector.load %arg12[%87, %c0_42, %c0_43] : memref<8x8x256xf32, #tpu.memory_space<vmem>>, vector<1x8x256xf32>
    %89 = vector.shape_cast %88 : vector<1x8x256xf32> to vector<8x256xf32>
    %c7_i32_44 = arith.constant 7 : i32
    %90 = arith.subi %c7_i32_44, %c1_i32 : i32
    %91 = arith.index_cast %90 : i32 to index
    %c0_45 = arith.constant 0 : index
    %c0_46 = arith.constant 0 : index
    %92 = vector.load %arg13[%91, %c0_45, %c0_46] : memref<8x8x256xf32, #tpu.memory_space<vmem>>, vector<1x8x256xf32>
    %93 = vector.shape_cast %92 : vector<1x8x256xf32> to vector<8x256xf32>
    %94 = arith.addf %89, %93 : vector<8x256xf32>
    %cst_47 = arith.constant dense<0.000000e+00> : vector<8x256xf32>
    %95 = tpu.matmul %83, %4, %cst_47 {dimension_numbers = #tpu.dot_dimension_numbers<[1], [0], [0], [1], [0, 0, 1, 1], [], []>} : vector<8x64xf32>, vector<64x256xf32>, vector<8x256xf32> -> vector<8x256xf32>
    %96 = arith.addf %94, %95 : vector<8x256xf32>
    %97 = vector.extract_strided_slice %96 {offsets = [0, 0], sizes = [8, 192], strides = [1, 1]} : vector<8x256xf32> to vector<8x192xf32>
    %98 = arith.negf %97 : vector<8x192xf32>
    %99 = math.exp %98 : vector<8x192xf32>
    %cst_48 = arith.constant 1.000000e+00 : f32
    %100 = vector.broadcast %cst_48 : f32 to vector<8x192xf32>
    %101 = arith.addf %100, %99 : vector<8x192xf32>
    %102 = arith.divf %100, %101 : vector<8x192xf32>
    %103 = vector.extract_strided_slice %102 {offsets = [0, 0], sizes = [8, 64], strides = [1, 1]} : vector<8x192xf32> to vector<8x64xf32>
    %104 = vector.extract_strided_slice %102 {offsets = [0, 64], sizes = [8, 64], strides = [1, 1]} : vector<8x192xf32> to vector<8x64xf32>
    %105 = vector.extract_strided_slice %102 {offsets = [0, 128], sizes = [8, 64], strides = [1, 1]} : vector<8x192xf32> to vector<8x64xf32>
    %106 = vector.extract_strided_slice %96 {offsets = [0, 192], sizes = [8, 64], strides = [1, 1]} : vector<8x256xf32> to vector<8x64xf32>
    %107 = math.tanh %106 : vector<8x64xf32>
    %108 = arith.mulf %104, %84 : vector<8x64xf32>
    %109 = arith.mulf %103, %107 : vector<8x64xf32>
    %110 = arith.addf %108, %109 : vector<8x64xf32>
    %111 = math.tanh %110 : vector<8x64xf32>
    %112 = arith.mulf %105, %111 : vector<8x64xf32>
    %113 = vector.broadcast %85 : i32 to vector<8x64xi32>
    %114 = vector.broadcast %86 : i32 to vector<8x64xi32>
    %115 = arith.select %24, %113, %114 : vector<8x64xi1>, vector<8x64xi32>
    %116 = vector.broadcast %3 : vector<8x1xi32> to vector<8x64xi32>
    %117 = arith.cmpi slt, %115, %116 : vector<8x64xi32>
    %118 = vector.broadcast %85 : i32 to vector<8x1xi32>
    %119 = arith.cmpi slt, %118, %3 : vector<8x1xi32>
    %120 = vector.extract_strided_slice %112 {offsets = [0, 0], sizes = [8, 32], strides = [1, 1]} : vector<8x64xf32> to vector<8x32xf32>
    %cst_49 = arith.constant 0.000000e+00 : f32
    %121 = vector.shape_cast %119 : vector<8x1xi1> to vector<8x1xi1>
    %122 = vector.broadcast %121 : vector<8x1xi1> to vector<8x32xi1>
    %123 = vector.broadcast %cst_49 : f32 to vector<8x32xf32>
    %124 = arith.select %122, %120, %123 : vector<8x32xi1>, vector<8x32xf32>
    %125 = arith.index_cast %c1_i32 : i32 to index
    %c0_50 = arith.constant 0 : index
    %c0_51 = arith.constant 0 : index
    %126 = vector.load %arg8[%125, %c0_50, %c0_51] : memref<8x8x32xf32, #tpu.memory_space<vmem>>, vector<1x8x32xf32>
    %127 = vector.shape_cast %126 : vector<1x8x32xf32> to vector<8x32xf32>
    %128 = vector.shape_cast %124 : vector<8x32xf32> to vector<1x8x32xf32>
    tpu.vector_store %arg8[%125, %c0_50, %c0_51], %128 {strides = array<i32>} : memref<8x8x32xf32, #tpu.memory_space<vmem>>, vector<1x8x32xf32>,
    %129 = vector.broadcast %86 : i32 to vector<8x1xi32>
    %130 = arith.cmpi slt, %129, %3 : vector<8x1xi32>
    %131 = vector.extract_strided_slice %112 {offsets = [0, 32], sizes = [8, 32], strides = [1, 1]} : vector<8x64xf32> to vector<8x32xf32>
    %cst_52 = arith.constant 0.000000e+00 : f32
    %132 = vector.shape_cast %130 : vector<8x1xi1> to vector<8x1xi1>
    %133 = vector.broadcast %132 : vector<8x1xi1> to vector<8x32xi1>
    %134 = vector.broadcast %cst_52 : f32 to vector<8x32xf32>
    %135 = arith.select %133, %131, %134 : vector<8x32xi1>, vector<8x32xf32>
    %c7_i32_53 = arith.constant 7 : i32
    %136 = arith.subi %c7_i32_53, %c1_i32 : i32
    %137 = arith.index_cast %136 : i32 to index
    %c0_54 = arith.constant 0 : index
    %c0_55 = arith.constant 0 : index
    %138 = vector.load %arg9[%137, %c0_54, %c0_55] : memref<8x8x32xf32, #tpu.memory_space<vmem>>, vector<1x8x32xf32>
    %139 = vector.shape_cast %138 : vector<1x8x32xf32> to vector<8x32xf32>
    %140 = vector.shape_cast %135 : vector<8x32xf32> to vector<1x8x32xf32>
    tpu.vector_store %arg9[%137, %c0_54, %c0_55], %140 {strides = array<i32>} : memref<8x8x32xf32, #tpu.memory_space<vmem>>, vector<1x8x32xf32>,
    %141 = arith.select %117, %112, %83 : vector<8x64xi1>, vector<8x64xf32>
    %142 = arith.select %117, %110, %84 : vector<8x64xi1>, vector<8x64xf32>
    %c2_i32 = arith.constant 2 : i32
    %143 = arith.addi %21, %c2_i32 : i32
    %c15_i32_56 = arith.constant 15 : i32
    %144 = arith.subi %c15_i32_56, %143 : i32
    %145 = arith.index_cast %c2_i32 : i32 to index
    %c0_57 = arith.constant 0 : index
    %c0_58 = arith.constant 0 : index
    %146 = vector.load %arg12[%145, %c0_57, %c0_58] : memref<8x8x256xf32, #tpu.memory_space<vmem>>, vector<1x8x256xf32>
    %147 = vector.shape_cast %146 : vector<1x8x256xf32> to vector<8x256xf32>
    %c7_i32_59 = arith.constant 7 : i32
    %148 = arith.subi %c7_i32_59, %c2_i32 : i32
    %149 = arith.index_cast %148 : i32 to index
    %c0_60 = arith.constant 0 : index
    %c0_61 = arith.constant 0 : index
    %150 = vector.load %arg13[%149, %c0_60, %c0_61] : memref<8x8x256xf32, #tpu.memory_space<vmem>>, vector<1x8x256xf32>
    %151 = vector.shape_cast %150 : vector<1x8x256xf32> to vector<8x256xf32>
    %152 = arith.addf %147, %151 : vector<8x256xf32>
    %cst_62 = arith.constant dense<0.000000e+00> : vector<8x256xf32>
    %153 = tpu.matmul %141, %4, %cst_62 {dimension_numbers = #tpu.dot_dimension_numbers<[1], [0], [0], [1], [0, 0, 1, 1], [], []>} : vector<8x64xf32>, vector<64x256xf32>, vector<8x256xf32> -> vector<8x256xf32>
    %154 = arith.addf %152, %153 : vector<8x256xf32>
    %155 = vector.extract_strided_slice %154 {offsets = [0, 0], sizes = [8, 192], strides = [1, 1]} : vector<8x256xf32> to vector<8x192xf32>
    %156 = arith.negf %155 : vector<8x192xf32>
    %157 = math.exp %156 : vector<8x192xf32>
    %cst_63 = arith.constant 1.000000e+00 : f32
    %158 = vector.broadcast %cst_63 : f32 to vector<8x192xf32>
    %159 = arith.addf %158, %157 : vector<8x192xf32>
    %160 = arith.divf %158, %159 : vector<8x192xf32>
    %161 = vector.extract_strided_slice %160 {offsets = [0, 0], sizes = [8, 64], strides = [1, 1]} : vector<8x192xf32> to vector<8x64xf32>
    %162 = vector.extract_strided_slice %160 {offsets = [0, 64], sizes = [8, 64], strides = [1, 1]} : vector<8x192xf32> to vector<8x64xf32>
    %163 = vector.extract_strided_slice %160 {offsets = [0, 128], sizes = [8, 64], strides = [1, 1]} : vector<8x192xf32> to vector<8x64xf32>
    %164 = vector.extract_strided_slice %154 {offsets = [0, 192], sizes = [8, 64], strides = [1, 1]} : vector<8x256xf32> to vector<8x64xf32>
    %165 = math.tanh %164 : vector<8x64xf32>
    %166 = arith.mulf %162, %142 : vector<8x64xf32>
    %167 = arith.mulf %161, %165 : vector<8x64xf32>
    %168 = arith.addf %166, %167 : vector<8x64xf32>
    %169 = math.tanh %168 : vector<8x64xf32>
    %170 = arith.mulf %163, %169 : vector<8x64xf32>
    %171 = vector.broadcast %143 : i32 to vector<8x64xi32>
    %172 = vector.broadcast %144 : i32 to vector<8x64xi32>
    %173 = arith.select %24, %171, %172 : vector<8x64xi1>, vector<8x64xi32>
    %174 = vector.broadcast %3 : vector<8x1xi32> to vector<8x64xi32>
    %175 = arith.cmpi slt, %173, %174 : vector<8x64xi32>
    %176 = vector.broadcast %143 : i32 to vector<8x1xi32>
    %177 = arith.cmpi slt, %176, %3 : vector<8x1xi32>
    %178 = vector.extract_strided_slice %170 {offsets = [0, 0], sizes = [8, 32], strides = [1, 1]} : vector<8x64xf32> to vector<8x32xf32>
    %cst_64 = arith.constant 0.000000e+00 : f32
    %179 = vector.shape_cast %177 : vector<8x1xi1> to vector<8x1xi1>
    %180 = vector.broadcast %179 : vector<8x1xi1> to vector<8x32xi1>
    %181 = vector.broadcast %cst_64 : f32 to vector<8x32xf32>
    %182 = arith.select %180, %178, %181 : vector<8x32xi1>, vector<8x32xf32>
    %183 = arith.index_cast %c2_i32 : i32 to index
    %c0_65 = arith.constant 0 : index
    %c0_66 = arith.constant 0 : index
    %184 = vector.load %arg8[%183, %c0_65, %c0_66] : memref<8x8x32xf32, #tpu.memory_space<vmem>>, vector<1x8x32xf32>
    %185 = vector.shape_cast %184 : vector<1x8x32xf32> to vector<8x32xf32>
    %186 = vector.shape_cast %182 : vector<8x32xf32> to vector<1x8x32xf32>
    tpu.vector_store %arg8[%183, %c0_65, %c0_66], %186 {strides = array<i32>} : memref<8x8x32xf32, #tpu.memory_space<vmem>>, vector<1x8x32xf32>,
    %187 = vector.broadcast %144 : i32 to vector<8x1xi32>
    %188 = arith.cmpi slt, %187, %3 : vector<8x1xi32>
    %189 = vector.extract_strided_slice %170 {offsets = [0, 32], sizes = [8, 32], strides = [1, 1]} : vector<8x64xf32> to vector<8x32xf32>
    %cst_67 = arith.constant 0.000000e+00 : f32
    %190 = vector.shape_cast %188 : vector<8x1xi1> to vector<8x1xi1>
    %191 = vector.broadcast %190 : vector<8x1xi1> to vector<8x32xi1>
    %192 = vector.broadcast %cst_67 : f32 to vector<8x32xf32>
    %193 = arith.select %191, %189, %192 : vector<8x32xi1>, vector<8x32xf32>
    %c7_i32_68 = arith.constant 7 : i32
    %194 = arith.subi %c7_i32_68, %c2_i32 : i32
    %195 = arith.index_cast %194 : i32 to index
    %c0_69 = arith.constant 0 : index
    %c0_70 = arith.constant 0 : index
    %196 = vector.load %arg9[%195, %c0_69, %c0_70] : memref<8x8x32xf32, #tpu.memory_space<vmem>>, vector<1x8x32xf32>
    %197 = vector.shape_cast %196 : vector<1x8x32xf32> to vector<8x32xf32>
    %198 = vector.shape_cast %193 : vector<8x32xf32> to vector<1x8x32xf32>
    tpu.vector_store %arg9[%195, %c0_69, %c0_70], %198 {strides = array<i32>} : memref<8x8x32xf32, #tpu.memory_space<vmem>>, vector<1x8x32xf32>,
    %199 = arith.select %175, %170, %141 : vector<8x64xi1>, vector<8x64xf32>
    %200 = arith.select %175, %168, %142 : vector<8x64xi1>, vector<8x64xf32>
    %c3_i32 = arith.constant 3 : i32
    %201 = arith.addi %21, %c3_i32 : i32
    %c15_i32_71 = arith.constant 15 : i32
    %202 = arith.subi %c15_i32_71, %201 : i32
    %203 = arith.index_cast %c3_i32 : i32 to index
    %c0_72 = arith.constant 0 : index
    %c0_73 = arith.constant 0 : index
    %204 = vector.load %arg12[%203, %c0_72, %c0_73] : memref<8x8x256xf32, #tpu.memory_space<vmem>>, vector<1x8x256xf32>
    %205 = vector.shape_cast %204 : vector<1x8x256xf32> to vector<8x256xf32>
    %c7_i32_74 = arith.constant 7 : i32
    %206 = arith.subi %c7_i32_74, %c3_i32 : i32
    %207 = arith.index_cast %206 : i32 to index
    %c0_75 = arith.constant 0 : index
    %c0_76 = arith.constant 0 : index
    %208 = vector.load %arg13[%207, %c0_75, %c0_76] : memref<8x8x256xf32, #tpu.memory_space<vmem>>, vector<1x8x256xf32>
    %209 = vector.shape_cast %208 : vector<1x8x256xf32> to vector<8x256xf32>
    %210 = arith.addf %205, %209 : vector<8x256xf32>
    %cst_77 = arith.constant dense<0.000000e+00> : vector<8x256xf32>
    %211 = tpu.matmul %199, %4, %cst_77 {dimension_numbers = #tpu.dot_dimension_numbers<[1], [0], [0], [1], [0, 0, 1, 1], [], []>} : vector<8x64xf32>, vector<64x256xf32>, vector<8x256xf32> -> vector<8x256xf32>
    %212 = arith.addf %210, %211 : vector<8x256xf32>
    %213 = vector.extract_strided_slice %212 {offsets = [0, 0], sizes = [8, 192], strides = [1, 1]} : vector<8x256xf32> to vector<8x192xf32>
    %214 = arith.negf %213 : vector<8x192xf32>
    %215 = math.exp %214 : vector<8x192xf32>
    %cst_78 = arith.constant 1.000000e+00 : f32
    %216 = vector.broadcast %cst_78 : f32 to vector<8x192xf32>
    %217 = arith.addf %216, %215 : vector<8x192xf32>
    %218 = arith.divf %216, %217 : vector<8x192xf32>
    %219 = vector.extract_strided_slice %218 {offsets = [0, 0], sizes = [8, 64], strides = [1, 1]} : vector<8x192xf32> to vector<8x64xf32>
    %220 = vector.extract_strided_slice %218 {offsets = [0, 64], sizes = [8, 64], strides = [1, 1]} : vector<8x192xf32> to vector<8x64xf32>
    %221 = vector.extract_strided_slice %218 {offsets = [0, 128], sizes = [8, 64], strides = [1, 1]} : vector<8x192xf32> to vector<8x64xf32>
    %222 = vector.extract_strided_slice %212 {offsets = [0, 192], sizes = [8, 64], strides = [1, 1]} : vector<8x256xf32> to vector<8x64xf32>
    %223 = math.tanh %222 : vector<8x64xf32>
    %224 = arith.mulf %220, %200 : vector<8x64xf32>
    %225 = arith.mulf %219, %223 : vector<8x64xf32>
    %226 = arith.addf %224, %225 : vector<8x64xf32>
    %227 = math.tanh %226 : vector<8x64xf32>
    %228 = arith.mulf %221, %227 : vector<8x64xf32>
    %229 = vector.broadcast %201 : i32 to vector<8x64xi32>
    %230 = vector.broadcast %202 : i32 to vector<8x64xi32>
    %231 = arith.select %24, %229, %230 : vector<8x64xi1>, vector<8x64xi32>
    %232 = vector.broadcast %3 : vector<8x1xi32> to vector<8x64xi32>
    %233 = arith.cmpi slt, %231, %232 : vector<8x64xi32>
    %234 = vector.broadcast %201 : i32 to vector<8x1xi32>
    %235 = arith.cmpi slt, %234, %3 : vector<8x1xi32>
    %236 = vector.extract_strided_slice %228 {offsets = [0, 0], sizes = [8, 32], strides = [1, 1]} : vector<8x64xf32> to vector<8x32xf32>
    %cst_79 = arith.constant 0.000000e+00 : f32
    %237 = vector.shape_cast %235 : vector<8x1xi1> to vector<8x1xi1>
    %238 = vector.broadcast %237 : vector<8x1xi1> to vector<8x32xi1>
    %239 = vector.broadcast %cst_79 : f32 to vector<8x32xf32>
    %240 = arith.select %238, %236, %239 : vector<8x32xi1>, vector<8x32xf32>
    %241 = arith.index_cast %c3_i32 : i32 to index
    %c0_80 = arith.constant 0 : index
    %c0_81 = arith.constant 0 : index
    %242 = vector.load %arg8[%241, %c0_80, %c0_81] : memref<8x8x32xf32, #tpu.memory_space<vmem>>, vector<1x8x32xf32>
    %243 = vector.shape_cast %242 : vector<1x8x32xf32> to vector<8x32xf32>
    %244 = vector.shape_cast %240 : vector<8x32xf32> to vector<1x8x32xf32>
    tpu.vector_store %arg8[%241, %c0_80, %c0_81], %244 {strides = array<i32>} : memref<8x8x32xf32, #tpu.memory_space<vmem>>, vector<1x8x32xf32>,
    %245 = vector.broadcast %202 : i32 to vector<8x1xi32>
    %246 = arith.cmpi slt, %245, %3 : vector<8x1xi32>
    %247 = vector.extract_strided_slice %228 {offsets = [0, 32], sizes = [8, 32], strides = [1, 1]} : vector<8x64xf32> to vector<8x32xf32>
    %cst_82 = arith.constant 0.000000e+00 : f32
    %248 = vector.shape_cast %246 : vector<8x1xi1> to vector<8x1xi1>
    %249 = vector.broadcast %248 : vector<8x1xi1> to vector<8x32xi1>
    %250 = vector.broadcast %cst_82 : f32 to vector<8x32xf32>
    %251 = arith.select %249, %247, %250 : vector<8x32xi1>, vector<8x32xf32>
    %c7_i32_83 = arith.constant 7 : i32
    %252 = arith.subi %c7_i32_83, %c3_i32 : i32
    %253 = arith.index_cast %252 : i32 to index
    %c0_84 = arith.constant 0 : index
    %c0_85 = arith.constant 0 : index
    %254 = vector.load %arg9[%253, %c0_84, %c0_85] : memref<8x8x32xf32, #tpu.memory_space<vmem>>, vector<1x8x32xf32>
    %255 = vector.shape_cast %254 : vector<1x8x32xf32> to vector<8x32xf32>
    %256 = vector.shape_cast %251 : vector<8x32xf32> to vector<1x8x32xf32>
    tpu.vector_store %arg9[%253, %c0_84, %c0_85], %256 {strides = array<i32>} : memref<8x8x32xf32, #tpu.memory_space<vmem>>, vector<1x8x32xf32>,
    %257 = arith.select %233, %228, %199 : vector<8x64xi1>, vector<8x64xf32>
    %258 = arith.select %233, %226, %200 : vector<8x64xi1>, vector<8x64xf32>
    %c4_i32 = arith.constant 4 : i32
    %259 = arith.addi %21, %c4_i32 : i32
    %c15_i32_86 = arith.constant 15 : i32
    %260 = arith.subi %c15_i32_86, %259 : i32
    %261 = arith.index_cast %c4_i32 : i32 to index
    %c0_87 = arith.constant 0 : index
    %c0_88 = arith.constant 0 : index
    %262 = vector.load %arg12[%261, %c0_87, %c0_88] : memref<8x8x256xf32, #tpu.memory_space<vmem>>, vector<1x8x256xf32>
    %263 = vector.shape_cast %262 : vector<1x8x256xf32> to vector<8x256xf32>
    %c7_i32_89 = arith.constant 7 : i32
    %264 = arith.subi %c7_i32_89, %c4_i32 : i32
    %265 = arith.index_cast %264 : i32 to index
    %c0_90 = arith.constant 0 : index
    %c0_91 = arith.constant 0 : index
    %266 = vector.load %arg13[%265, %c0_90, %c0_91] : memref<8x8x256xf32, #tpu.memory_space<vmem>>, vector<1x8x256xf32>
    %267 = vector.shape_cast %266 : vector<1x8x256xf32> to vector<8x256xf32>
    %268 = arith.addf %263, %267 : vector<8x256xf32>
    %cst_92 = arith.constant dense<0.000000e+00> : vector<8x256xf32>
    %269 = tpu.matmul %257, %4, %cst_92 {dimension_numbers = #tpu.dot_dimension_numbers<[1], [0], [0], [1], [0, 0, 1, 1], [], []>} : vector<8x64xf32>, vector<64x256xf32>, vector<8x256xf32> -> vector<8x256xf32>
    %270 = arith.addf %268, %269 : vector<8x256xf32>
    %271 = vector.extract_strided_slice %270 {offsets = [0, 0], sizes = [8, 192], strides = [1, 1]} : vector<8x256xf32> to vector<8x192xf32>
    %272 = arith.negf %271 : vector<8x192xf32>
    %273 = math.exp %272 : vector<8x192xf32>
    %cst_93 = arith.constant 1.000000e+00 : f32
    %274 = vector.broadcast %cst_93 : f32 to vector<8x192xf32>
    %275 = arith.addf %274, %273 : vector<8x192xf32>
    %276 = arith.divf %274, %275 : vector<8x192xf32>
    %277 = vector.extract_strided_slice %276 {offsets = [0, 0], sizes = [8, 64], strides = [1, 1]} : vector<8x192xf32> to vector<8x64xf32>
    %278 = vector.extract_strided_slice %276 {offsets = [0, 64], sizes = [8, 64], strides = [1, 1]} : vector<8x192xf32> to vector<8x64xf32>
    %279 = vector.extract_strided_slice %276 {offsets = [0, 128], sizes = [8, 64], strides = [1, 1]} : vector<8x192xf32> to vector<8x64xf32>
    %280 = vector.extract_strided_slice %270 {offsets = [0, 192], sizes = [8, 64], strides = [1, 1]} : vector<8x256xf32> to vector<8x64xf32>
    %281 = math.tanh %280 : vector<8x64xf32>
    %282 = arith.mulf %278, %258 : vector<8x64xf32>
    %283 = arith.mulf %277, %281 : vector<8x64xf32>
    %284 = arith.addf %282, %283 : vector<8x64xf32>
    %285 = math.tanh %284 : vector<8x64xf32>
    %286 = arith.mulf %279, %285 : vector<8x64xf32>
    %287 = vector.broadcast %259 : i32 to vector<8x64xi32>
    %288 = vector.broadcast %260 : i32 to vector<8x64xi32>
    %289 = arith.select %24, %287, %288 : vector<8x64xi1>, vector<8x64xi32>
    %290 = vector.broadcast %3 : vector<8x1xi32> to vector<8x64xi32>
    %291 = arith.cmpi slt, %289, %290 : vector<8x64xi32>
    %292 = vector.broadcast %259 : i32 to vector<8x1xi32>
    %293 = arith.cmpi slt, %292, %3 : vector<8x1xi32>
    %294 = vector.extract_strided_slice %286 {offsets = [0, 0], sizes = [8, 32], strides = [1, 1]} : vector<8x64xf32> to vector<8x32xf32>
    %cst_94 = arith.constant 0.000000e+00 : f32
    %295 = vector.shape_cast %293 : vector<8x1xi1> to vector<8x1xi1>
    %296 = vector.broadcast %295 : vector<8x1xi1> to vector<8x32xi1>
    %297 = vector.broadcast %cst_94 : f32 to vector<8x32xf32>
    %298 = arith.select %296, %294, %297 : vector<8x32xi1>, vector<8x32xf32>
    %299 = arith.index_cast %c4_i32 : i32 to index
    %c0_95 = arith.constant 0 : index
    %c0_96 = arith.constant 0 : index
    %300 = vector.load %arg8[%299, %c0_95, %c0_96] : memref<8x8x32xf32, #tpu.memory_space<vmem>>, vector<1x8x32xf32>
    %301 = vector.shape_cast %300 : vector<1x8x32xf32> to vector<8x32xf32>
    %302 = vector.shape_cast %298 : vector<8x32xf32> to vector<1x8x32xf32>
    tpu.vector_store %arg8[%299, %c0_95, %c0_96], %302 {strides = array<i32>} : memref<8x8x32xf32, #tpu.memory_space<vmem>>, vector<1x8x32xf32>,
    %303 = vector.broadcast %260 : i32 to vector<8x1xi32>
    %304 = arith.cmpi slt, %303, %3 : vector<8x1xi32>
    %305 = vector.extract_strided_slice %286 {offsets = [0, 32], sizes = [8, 32], strides = [1, 1]} : vector<8x64xf32> to vector<8x32xf32>
    %cst_97 = arith.constant 0.000000e+00 : f32
    %306 = vector.shape_cast %304 : vector<8x1xi1> to vector<8x1xi1>
    %307 = vector.broadcast %306 : vector<8x1xi1> to vector<8x32xi1>
    %308 = vector.broadcast %cst_97 : f32 to vector<8x32xf32>
    %309 = arith.select %307, %305, %308 : vector<8x32xi1>, vector<8x32xf32>
    %c7_i32_98 = arith.constant 7 : i32
    %310 = arith.subi %c7_i32_98, %c4_i32 : i32
    %311 = arith.index_cast %310 : i32 to index
    %c0_99 = arith.constant 0 : index
    %c0_100 = arith.constant 0 : index
    %312 = vector.load %arg9[%311, %c0_99, %c0_100] : memref<8x8x32xf32, #tpu.memory_space<vmem>>, vector<1x8x32xf32>
    %313 = vector.shape_cast %312 : vector<1x8x32xf32> to vector<8x32xf32>
    %314 = vector.shape_cast %309 : vector<8x32xf32> to vector<1x8x32xf32>
    tpu.vector_store %arg9[%311, %c0_99, %c0_100], %314 {strides = array<i32>} : memref<8x8x32xf32, #tpu.memory_space<vmem>>, vector<1x8x32xf32>,
    %315 = arith.select %291, %286, %257 : vector<8x64xi1>, vector<8x64xf32>
    %316 = arith.select %291, %284, %258 : vector<8x64xi1>, vector<8x64xf32>
    %c5_i32 = arith.constant 5 : i32
    %317 = arith.addi %21, %c5_i32 : i32
    %c15_i32_101 = arith.constant 15 : i32
    %318 = arith.subi %c15_i32_101, %317 : i32
    %319 = arith.index_cast %c5_i32 : i32 to index
    %c0_102 = arith.constant 0 : index
    %c0_103 = arith.constant 0 : index
    %320 = vector.load %arg12[%319, %c0_102, %c0_103] : memref<8x8x256xf32, #tpu.memory_space<vmem>>, vector<1x8x256xf32>
    %321 = vector.shape_cast %320 : vector<1x8x256xf32> to vector<8x256xf32>
    %c7_i32_104 = arith.constant 7 : i32
    %322 = arith.subi %c7_i32_104, %c5_i32 : i32
    %323 = arith.index_cast %322 : i32 to index
    %c0_105 = arith.constant 0 : index
    %c0_106 = arith.constant 0 : index
    %324 = vector.load %arg13[%323, %c0_105, %c0_106] : memref<8x8x256xf32, #tpu.memory_space<vmem>>, vector<1x8x256xf32>
    %325 = vector.shape_cast %324 : vector<1x8x256xf32> to vector<8x256xf32>
    %326 = arith.addf %321, %325 : vector<8x256xf32>
    %cst_107 = arith.constant dense<0.000000e+00> : vector<8x256xf32>
    %327 = tpu.matmul %315, %4, %cst_107 {dimension_numbers = #tpu.dot_dimension_numbers<[1], [0], [0], [1], [0, 0, 1, 1], [], []>} : vector<8x64xf32>, vector<64x256xf32>, vector<8x256xf32> -> vector<8x256xf32>
    %328 = arith.addf %326, %327 : vector<8x256xf32>
    %329 = vector.extract_strided_slice %328 {offsets = [0, 0], sizes = [8, 192], strides = [1, 1]} : vector<8x256xf32> to vector<8x192xf32>
    %330 = arith.negf %329 : vector<8x192xf32>
    %331 = math.exp %330 : vector<8x192xf32>
    %cst_108 = arith.constant 1.000000e+00 : f32
    %332 = vector.broadcast %cst_108 : f32 to vector<8x192xf32>
    %333 = arith.addf %332, %331 : vector<8x192xf32>
    %334 = arith.divf %332, %333 : vector<8x192xf32>
    %335 = vector.extract_strided_slice %334 {offsets = [0, 0], sizes = [8, 64], strides = [1, 1]} : vector<8x192xf32> to vector<8x64xf32>
    %336 = vector.extract_strided_slice %334 {offsets = [0, 64], sizes = [8, 64], strides = [1, 1]} : vector<8x192xf32> to vector<8x64xf32>
    %337 = vector.extract_strided_slice %334 {offsets = [0, 128], sizes = [8, 64], strides = [1, 1]} : vector<8x192xf32> to vector<8x64xf32>
    %338 = vector.extract_strided_slice %328 {offsets = [0, 192], sizes = [8, 64], strides = [1, 1]} : vector<8x256xf32> to vector<8x64xf32>
    %339 = math.tanh %338 : vector<8x64xf32>
    %340 = arith.mulf %336, %316 : vector<8x64xf32>
    %341 = arith.mulf %335, %339 : vector<8x64xf32>
    %342 = arith.addf %340, %341 : vector<8x64xf32>
    %343 = math.tanh %342 : vector<8x64xf32>
    %344 = arith.mulf %337, %343 : vector<8x64xf32>
    %345 = vector.broadcast %317 : i32 to vector<8x64xi32>
    %346 = vector.broadcast %318 : i32 to vector<8x64xi32>
    %347 = arith.select %24, %345, %346 : vector<8x64xi1>, vector<8x64xi32>
    %348 = vector.broadcast %3 : vector<8x1xi32> to vector<8x64xi32>
    %349 = arith.cmpi slt, %347, %348 : vector<8x64xi32>
    %350 = vector.broadcast %317 : i32 to vector<8x1xi32>
    %351 = arith.cmpi slt, %350, %3 : vector<8x1xi32>
    %352 = vector.extract_strided_slice %344 {offsets = [0, 0], sizes = [8, 32], strides = [1, 1]} : vector<8x64xf32> to vector<8x32xf32>
    %cst_109 = arith.constant 0.000000e+00 : f32
    %353 = vector.shape_cast %351 : vector<8x1xi1> to vector<8x1xi1>
    %354 = vector.broadcast %353 : vector<8x1xi1> to vector<8x32xi1>
    %355 = vector.broadcast %cst_109 : f32 to vector<8x32xf32>
    %356 = arith.select %354, %352, %355 : vector<8x32xi1>, vector<8x32xf32>
    %357 = arith.index_cast %c5_i32 : i32 to index
    %c0_110 = arith.constant 0 : index
    %c0_111 = arith.constant 0 : index
    %358 = vector.load %arg8[%357, %c0_110, %c0_111] : memref<8x8x32xf32, #tpu.memory_space<vmem>>, vector<1x8x32xf32>
    %359 = vector.shape_cast %358 : vector<1x8x32xf32> to vector<8x32xf32>
    %360 = vector.shape_cast %356 : vector<8x32xf32> to vector<1x8x32xf32>
    tpu.vector_store %arg8[%357, %c0_110, %c0_111], %360 {strides = array<i32>} : memref<8x8x32xf32, #tpu.memory_space<vmem>>, vector<1x8x32xf32>,
    %361 = vector.broadcast %318 : i32 to vector<8x1xi32>
    %362 = arith.cmpi slt, %361, %3 : vector<8x1xi32>
    %363 = vector.extract_strided_slice %344 {offsets = [0, 32], sizes = [8, 32], strides = [1, 1]} : vector<8x64xf32> to vector<8x32xf32>
    %cst_112 = arith.constant 0.000000e+00 : f32
    %364 = vector.shape_cast %362 : vector<8x1xi1> to vector<8x1xi1>
    %365 = vector.broadcast %364 : vector<8x1xi1> to vector<8x32xi1>
    %366 = vector.broadcast %cst_112 : f32 to vector<8x32xf32>
    %367 = arith.select %365, %363, %366 : vector<8x32xi1>, vector<8x32xf32>
    %c7_i32_113 = arith.constant 7 : i32
    %368 = arith.subi %c7_i32_113, %c5_i32 : i32
    %369 = arith.index_cast %368 : i32 to index
    %c0_114 = arith.constant 0 : index
    %c0_115 = arith.constant 0 : index
    %370 = vector.load %arg9[%369, %c0_114, %c0_115] : memref<8x8x32xf32, #tpu.memory_space<vmem>>, vector<1x8x32xf32>
    %371 = vector.shape_cast %370 : vector<1x8x32xf32> to vector<8x32xf32>
    %372 = vector.shape_cast %367 : vector<8x32xf32> to vector<1x8x32xf32>
    tpu.vector_store %arg9[%369, %c0_114, %c0_115], %372 {strides = array<i32>} : memref<8x8x32xf32, #tpu.memory_space<vmem>>, vector<1x8x32xf32>,
    %373 = arith.select %349, %344, %315 : vector<8x64xi1>, vector<8x64xf32>
    %374 = arith.select %349, %342, %316 : vector<8x64xi1>, vector<8x64xf32>
    %c6_i32 = arith.constant 6 : i32
    %375 = arith.addi %21, %c6_i32 : i32
    %c15_i32_116 = arith.constant 15 : i32
    %376 = arith.subi %c15_i32_116, %375 : i32
    %377 = arith.index_cast %c6_i32 : i32 to index
    %c0_117 = arith.constant 0 : index
    %c0_118 = arith.constant 0 : index
    %378 = vector.load %arg12[%377, %c0_117, %c0_118] : memref<8x8x256xf32, #tpu.memory_space<vmem>>, vector<1x8x256xf32>
    %379 = vector.shape_cast %378 : vector<1x8x256xf32> to vector<8x256xf32>
    %c7_i32_119 = arith.constant 7 : i32
    %380 = arith.subi %c7_i32_119, %c6_i32 : i32
    %381 = arith.index_cast %380 : i32 to index
    %c0_120 = arith.constant 0 : index
    %c0_121 = arith.constant 0 : index
    %382 = vector.load %arg13[%381, %c0_120, %c0_121] : memref<8x8x256xf32, #tpu.memory_space<vmem>>, vector<1x8x256xf32>
    %383 = vector.shape_cast %382 : vector<1x8x256xf32> to vector<8x256xf32>
    %384 = arith.addf %379, %383 : vector<8x256xf32>
    %cst_122 = arith.constant dense<0.000000e+00> : vector<8x256xf32>
    %385 = tpu.matmul %373, %4, %cst_122 {dimension_numbers = #tpu.dot_dimension_numbers<[1], [0], [0], [1], [0, 0, 1, 1], [], []>} : vector<8x64xf32>, vector<64x256xf32>, vector<8x256xf32> -> vector<8x256xf32>
    %386 = arith.addf %384, %385 : vector<8x256xf32>
    %387 = vector.extract_strided_slice %386 {offsets = [0, 0], sizes = [8, 192], strides = [1, 1]} : vector<8x256xf32> to vector<8x192xf32>
    %388 = arith.negf %387 : vector<8x192xf32>
    %389 = math.exp %388 : vector<8x192xf32>
    %cst_123 = arith.constant 1.000000e+00 : f32
    %390 = vector.broadcast %cst_123 : f32 to vector<8x192xf32>
    %391 = arith.addf %390, %389 : vector<8x192xf32>
    %392 = arith.divf %390, %391 : vector<8x192xf32>
    %393 = vector.extract_strided_slice %392 {offsets = [0, 0], sizes = [8, 64], strides = [1, 1]} : vector<8x192xf32> to vector<8x64xf32>
    %394 = vector.extract_strided_slice %392 {offsets = [0, 64], sizes = [8, 64], strides = [1, 1]} : vector<8x192xf32> to vector<8x64xf32>
    %395 = vector.extract_strided_slice %392 {offsets = [0, 128], sizes = [8, 64], strides = [1, 1]} : vector<8x192xf32> to vector<8x64xf32>
    %396 = vector.extract_strided_slice %386 {offsets = [0, 192], sizes = [8, 64], strides = [1, 1]} : vector<8x256xf32> to vector<8x64xf32>
    %397 = math.tanh %396 : vector<8x64xf32>
    %398 = arith.mulf %394, %374 : vector<8x64xf32>
    %399 = arith.mulf %393, %397 : vector<8x64xf32>
    %400 = arith.addf %398, %399 : vector<8x64xf32>
    %401 = math.tanh %400 : vector<8x64xf32>
    %402 = arith.mulf %395, %401 : vector<8x64xf32>
    %403 = vector.broadcast %375 : i32 to vector<8x64xi32>
    %404 = vector.broadcast %376 : i32 to vector<8x64xi32>
    %405 = arith.select %24, %403, %404 : vector<8x64xi1>, vector<8x64xi32>
    %406 = vector.broadcast %3 : vector<8x1xi32> to vector<8x64xi32>
    %407 = arith.cmpi slt, %405, %406 : vector<8x64xi32>
    %408 = vector.broadcast %375 : i32 to vector<8x1xi32>
    %409 = arith.cmpi slt, %408, %3 : vector<8x1xi32>
    %410 = vector.extract_strided_slice %402 {offsets = [0, 0], sizes = [8, 32], strides = [1, 1]} : vector<8x64xf32> to vector<8x32xf32>
    %cst_124 = arith.constant 0.000000e+00 : f32
    %411 = vector.shape_cast %409 : vector<8x1xi1> to vector<8x1xi1>
    %412 = vector.broadcast %411 : vector<8x1xi1> to vector<8x32xi1>
    %413 = vector.broadcast %cst_124 : f32 to vector<8x32xf32>
    %414 = arith.select %412, %410, %413 : vector<8x32xi1>, vector<8x32xf32>
    %415 = arith.index_cast %c6_i32 : i32 to index
    %c0_125 = arith.constant 0 : index
    %c0_126 = arith.constant 0 : index
    %416 = vector.load %arg8[%415, %c0_125, %c0_126] : memref<8x8x32xf32, #tpu.memory_space<vmem>>, vector<1x8x32xf32>
    %417 = vector.shape_cast %416 : vector<1x8x32xf32> to vector<8x32xf32>
    %418 = vector.shape_cast %414 : vector<8x32xf32> to vector<1x8x32xf32>
    tpu.vector_store %arg8[%415, %c0_125, %c0_126], %418 {strides = array<i32>} : memref<8x8x32xf32, #tpu.memory_space<vmem>>, vector<1x8x32xf32>,
    %419 = vector.broadcast %376 : i32 to vector<8x1xi32>
    %420 = arith.cmpi slt, %419, %3 : vector<8x1xi32>
    %421 = vector.extract_strided_slice %402 {offsets = [0, 32], sizes = [8, 32], strides = [1, 1]} : vector<8x64xf32> to vector<8x32xf32>
    %cst_127 = arith.constant 0.000000e+00 : f32
    %422 = vector.shape_cast %420 : vector<8x1xi1> to vector<8x1xi1>
    %423 = vector.broadcast %422 : vector<8x1xi1> to vector<8x32xi1>
    %424 = vector.broadcast %cst_127 : f32 to vector<8x32xf32>
    %425 = arith.select %423, %421, %424 : vector<8x32xi1>, vector<8x32xf32>
    %c7_i32_128 = arith.constant 7 : i32
    %426 = arith.subi %c7_i32_128, %c6_i32 : i32
    %427 = arith.index_cast %426 : i32 to index
    %c0_129 = arith.constant 0 : index
    %c0_130 = arith.constant 0 : index
    %428 = vector.load %arg9[%427, %c0_129, %c0_130] : memref<8x8x32xf32, #tpu.memory_space<vmem>>, vector<1x8x32xf32>
    %429 = vector.shape_cast %428 : vector<1x8x32xf32> to vector<8x32xf32>
    %430 = vector.shape_cast %425 : vector<8x32xf32> to vector<1x8x32xf32>
    tpu.vector_store %arg9[%427, %c0_129, %c0_130], %430 {strides = array<i32>} : memref<8x8x32xf32, #tpu.memory_space<vmem>>, vector<1x8x32xf32>,
    %431 = arith.select %407, %402, %373 : vector<8x64xi1>, vector<8x64xf32>
    %432 = arith.select %407, %400, %374 : vector<8x64xi1>, vector<8x64xf32>
    %c7_i32_131 = arith.constant 7 : i32
    %433 = arith.addi %21, %c7_i32_131 : i32
    %c15_i32_132 = arith.constant 15 : i32
    %434 = arith.subi %c15_i32_132, %433 : i32
    %435 = arith.index_cast %c7_i32_131 : i32 to index
    %c0_133 = arith.constant 0 : index
    %c0_134 = arith.constant 0 : index
    %436 = vector.load %arg12[%435, %c0_133, %c0_134] : memref<8x8x256xf32, #tpu.memory_space<vmem>>, vector<1x8x256xf32>
    %437 = vector.shape_cast %436 : vector<1x8x256xf32> to vector<8x256xf32>
    %c7_i32_135 = arith.constant 7 : i32
    %438 = arith.subi %c7_i32_135, %c7_i32_131 : i32
    %439 = arith.index_cast %438 : i32 to index
    %c0_136 = arith.constant 0 : index
    %c0_137 = arith.constant 0 : index
    %440 = vector.load %arg13[%439, %c0_136, %c0_137] : memref<8x8x256xf32, #tpu.memory_space<vmem>>, vector<1x8x256xf32>
    %441 = vector.shape_cast %440 : vector<1x8x256xf32> to vector<8x256xf32>
    %442 = arith.addf %437, %441 : vector<8x256xf32>
    %cst_138 = arith.constant dense<0.000000e+00> : vector<8x256xf32>
    %443 = tpu.matmul %431, %4, %cst_138 {dimension_numbers = #tpu.dot_dimension_numbers<[1], [0], [0], [1], [0, 0, 1, 1], [], []>} : vector<8x64xf32>, vector<64x256xf32>, vector<8x256xf32> -> vector<8x256xf32>
    %444 = arith.addf %442, %443 : vector<8x256xf32>
    %445 = vector.extract_strided_slice %444 {offsets = [0, 0], sizes = [8, 192], strides = [1, 1]} : vector<8x256xf32> to vector<8x192xf32>
    %446 = arith.negf %445 : vector<8x192xf32>
    %447 = math.exp %446 : vector<8x192xf32>
    %cst_139 = arith.constant 1.000000e+00 : f32
    %448 = vector.broadcast %cst_139 : f32 to vector<8x192xf32>
    %449 = arith.addf %448, %447 : vector<8x192xf32>
    %450 = arith.divf %448, %449 : vector<8x192xf32>
    %451 = vector.extract_strided_slice %450 {offsets = [0, 0], sizes = [8, 64], strides = [1, 1]} : vector<8x192xf32> to vector<8x64xf32>
    %452 = vector.extract_strided_slice %450 {offsets = [0, 64], sizes = [8, 64], strides = [1, 1]} : vector<8x192xf32> to vector<8x64xf32>
    %453 = vector.extract_strided_slice %450 {offsets = [0, 128], sizes = [8, 64], strides = [1, 1]} : vector<8x192xf32> to vector<8x64xf32>
    %454 = vector.extract_strided_slice %444 {offsets = [0, 192], sizes = [8, 64], strides = [1, 1]} : vector<8x256xf32> to vector<8x64xf32>
    %455 = math.tanh %454 : vector<8x64xf32>
    %456 = arith.mulf %452, %432 : vector<8x64xf32>
    %457 = arith.mulf %451, %455 : vector<8x64xf32>
    %458 = arith.addf %456, %457 : vector<8x64xf32>
    %459 = math.tanh %458 : vector<8x64xf32>
    %460 = arith.mulf %453, %459 : vector<8x64xf32>
    %461 = vector.broadcast %433 : i32 to vector<8x64xi32>
    %462 = vector.broadcast %434 : i32 to vector<8x64xi32>
    %463 = arith.select %24, %461, %462 : vector<8x64xi1>, vector<8x64xi32>
    %464 = vector.broadcast %3 : vector<8x1xi32> to vector<8x64xi32>
    %465 = arith.cmpi slt, %463, %464 : vector<8x64xi32>
    %466 = vector.broadcast %433 : i32 to vector<8x1xi32>
    %467 = arith.cmpi slt, %466, %3 : vector<8x1xi32>
    %468 = vector.extract_strided_slice %460 {offsets = [0, 0], sizes = [8, 32], strides = [1, 1]} : vector<8x64xf32> to vector<8x32xf32>
    %cst_140 = arith.constant 0.000000e+00 : f32
    %469 = vector.shape_cast %467 : vector<8x1xi1> to vector<8x1xi1>
    %470 = vector.broadcast %469 : vector<8x1xi1> to vector<8x32xi1>
    %471 = vector.broadcast %cst_140 : f32 to vector<8x32xf32>
    %472 = arith.select %470, %468, %471 : vector<8x32xi1>, vector<8x32xf32>
    %473 = arith.index_cast %c7_i32_131 : i32 to index
    %c0_141 = arith.constant 0 : index
    %c0_142 = arith.constant 0 : index
    %474 = vector.load %arg8[%473, %c0_141, %c0_142] : memref<8x8x32xf32, #tpu.memory_space<vmem>>, vector<1x8x32xf32>
    %475 = vector.shape_cast %474 : vector<1x8x32xf32> to vector<8x32xf32>
    %476 = vector.shape_cast %472 : vector<8x32xf32> to vector<1x8x32xf32>
    tpu.vector_store %arg8[%473, %c0_141, %c0_142], %476 {strides = array<i32>} : memref<8x8x32xf32, #tpu.memory_space<vmem>>, vector<1x8x32xf32>,
    %477 = vector.broadcast %434 : i32 to vector<8x1xi32>
    %478 = arith.cmpi slt, %477, %3 : vector<8x1xi32>
    %479 = vector.extract_strided_slice %460 {offsets = [0, 32], sizes = [8, 32], strides = [1, 1]} : vector<8x64xf32> to vector<8x32xf32>
    %cst_143 = arith.constant 0.000000e+00 : f32
    %480 = vector.shape_cast %478 : vector<8x1xi1> to vector<8x1xi1>
    %481 = vector.broadcast %480 : vector<8x1xi1> to vector<8x32xi1>
    %482 = vector.broadcast %cst_143 : f32 to vector<8x32xf32>
    %483 = arith.select %481, %479, %482 : vector<8x32xi1>, vector<8x32xf32>
    %c7_i32_144 = arith.constant 7 : i32
    %484 = arith.subi %c7_i32_144, %c7_i32_131 : i32
    %485 = arith.index_cast %484 : i32 to index
    %c0_145 = arith.constant 0 : index
    %c0_146 = arith.constant 0 : index
    %486 = vector.load %arg9[%485, %c0_145, %c0_146] : memref<8x8x32xf32, #tpu.memory_space<vmem>>, vector<1x8x32xf32>
    %487 = vector.shape_cast %486 : vector<1x8x32xf32> to vector<8x32xf32>
    %488 = vector.shape_cast %483 : vector<8x32xf32> to vector<1x8x32xf32>
    tpu.vector_store %arg9[%485, %c0_145, %c0_146], %488 {strides = array<i32>} : memref<8x8x32xf32, #tpu.memory_space<vmem>>, vector<1x8x32xf32>,
    %489 = arith.select %465, %460, %431 : vector<8x64xi1>, vector<8x64xf32>
    %490 = arith.select %465, %458, %432 : vector<8x64xi1>, vector<8x64xf32>
    %c8_i32_147 = arith.constant 8 : i32
    %c0_148 = arith.constant 0 : index
    %c0_149 = arith.constant 0 : index
    %491 = vector.load %arg14[%c0_148, %c0_149] : memref<8x64xf32, #tpu.memory_space<vmem>>, vector<8x64xf32>
    tpu.vector_store %arg14[%c0_148, %c0_149], %489 {strides = array<i32>} : memref<8x64xf32, #tpu.memory_space<vmem>>, vector<8x64xf32>,
    %c0_150 = arith.constant 0 : index
    %c0_151 = arith.constant 0 : index
    %492 = vector.load %arg15[%c0_150, %c0_151] : memref<8x64xf32, #tpu.memory_space<vmem>>, vector<8x64xf32>
    tpu.vector_store %arg15[%c0_150, %c0_151], %490 {strides = array<i32>} : memref<8x64xf32, #tpu.memory_space<vmem>>, vector<8x64xf32>,
    %c1_i32_152 = arith.constant 1 : i32
    %493 = arith.cmpi eq, %arg0, %c1_i32_152 : i32
    %494 = arith.extui %493 : i1 to i32
    %c0_i32_153 = arith.constant 0 : i32
    %495 = arith.cmpi ne, %494, %c0_i32_153 : i32
    scf.if %495 {
      %c0_154 = arith.constant 0 : index
      %c0_155 = arith.constant 0 : index
      %496 = vector.load %arg10[%c0_154, %c0_155] : memref<8x64xf32, #tpu.memory_space<vmem>>, vector<8x64xf32>
      tpu.vector_store %arg10[%c0_154, %c0_155], %489 {strides = array<i32>} : memref<8x64xf32, #tpu.memory_space<vmem>>, vector<8x64xf32>,
      %c0_156 = arith.constant 0 : index
      %c0_157 = arith.constant 0 : index
      %497 = vector.load %arg11[%c0_156, %c0_157] : memref<8x64xf32, #tpu.memory_space<vmem>>, vector<8x64xf32>
      tpu.vector_store %arg11[%c0_156, %c0_157], %490 {strides = array<i32>} : memref<8x64xf32, #tpu.memory_space<vmem>>, vector<8x64xf32>,
    } else {
    }
    return
  }
  func.func @transform_0(%arg0: i32) -> (i32, i32) {
    %c0_i32 = arith.constant 0 : i32
    %c0_i32_0 = arith.constant 0 : i32
    %c0_i32_1 = arith.constant 0 : i32
    return %c0_i32, %c0_i32_0 : i32, i32
  }
  func.func @transform_1(%arg0: i32) -> (i32, i32, i32) {
    %c0_i32 = arith.constant 0 : i32
    %c0_i32_0 = arith.constant 0 : i32
    %c0_i32_1 = arith.constant 0 : i32
    return %arg0, %c0_i32, %c0_i32_0 : i32, i32, i32
  }
  func.func @transform_2(%arg0: i32) -> (i32, i32, i32) {
    %c1_i32 = arith.constant 1 : i32
    %0 = arith.subi %c1_i32, %arg0 : i32
    %c0_i32 = arith.constant 0 : i32
    %c0_i32_0 = arith.constant 0 : i32
    %c0_i32_1 = arith.constant 0 : i32
    return %0, %c0_i32, %c0_i32_0 : i32, i32, i32
  }
  func.func @transform_3(%arg0: i32) -> (i32, i32) {
    %c0_i32 = arith.constant 0 : i32
    %c0_i32_0 = arith.constant 0 : i32
    %c0_i32_1 = arith.constant 0 : i32
    return %c0_i32, %c0_i32_0 : i32, i32
  }
  func.func @transform_4(%arg0: i32) -> (i32, i32) {
    %c0_i32 = arith.constant 0 : i32
    %c0_i32_0 = arith.constant 0 : i32
    %c0_i32_1 = arith.constant 0 : i32
    return %c0_i32, %c0_i32_0 : i32, i32
  }
  func.func @transform_5(%arg0: i32) -> (i32, i32) {
    %c0_i32 = arith.constant 0 : i32
    %c0_i32_0 = arith.constant 0 : i32
    %c0_i32_1 = arith.constant 0 : i32
    return %c0_i32, %c0_i32_0 : i32, i32
  }
  func.func @transform_6(%arg0: i32) -> (i32, i32) {
    %c0_i32 = arith.constant 0 : i32
    %c0_i32_0 = arith.constant 0 : i32
    %c0_i32_1 = arith.constant 0 : i32
    return %c0_i32, %c0_i32_0 : i32, i32
  }
  func.func @transform_7(%arg0: i32) -> (i32, i32, i32) {
    %c0_i32 = arith.constant 0 : i32
    %c0_i32_0 = arith.constant 0 : i32
    %c0_i32_1 = arith.constant 0 : i32
    return %arg0, %c0_i32, %c0_i32_0 : i32, i32, i32
  }
  func.func @transform_8(%arg0: i32) -> (i32, i32, i32) {
    %c1_i32 = arith.constant 1 : i32
    %0 = arith.subi %c1_i32, %arg0 : i32
    %c0_i32 = arith.constant 0 : i32
    %c0_i32_0 = arith.constant 0 : i32
    %c0_i32_1 = arith.constant 0 : i32
    return %0, %c0_i32, %c0_i32_0 : i32, i32, i32
  }
  func.func @transform_9(%arg0: i32) -> (i32, i32) {
    %c0_i32 = arith.constant 0 : i32
    %c0_i32_0 = arith.constant 0 : i32
    %c0_i32_1 = arith.constant 0 : i32
    return %c0_i32, %c0_i32_0 : i32, i32
  }
  func.func @transform_10(%arg0: i32) -> (i32, i32) {
    %c0_i32 = arith.constant 0 : i32
    %c0_i32_0 = arith.constant 0 : i32
    %c0_i32_1 = arith.constant 0 : i32
    return %c0_i32, %c0_i32_0 : i32, i32
  }
}

</mosaic_0001>

<bundles_post_ra>
// kernel: tpu_custom_call.1
= control target key start
LH: loop header
LB: loop body
LE: loop exit
PB: predicated region body
PF: predicated region fallthrough
CT: control target
= control target key end

     0   :  { %s4267_s0 = inlined_call_operand.vmem [shape: s32[8,1], index: 0, kind: input, shape index: {}]   ;;  %s4268_s1 = inlined_call_operand.hbm [shape: f32[16,8,32], index: 1, kind: input, shape index: {}]   ;;  %s4269_s2 = inlined_call_operand.hbm [shape: f32[16,8,32], index: 2, kind: input, shape index: {}]   ;;  %s4270_s3 = inlined_call_operand.hbm [shape: f32[32,256], index: 3, kind: input, shape index: {}]   ;;  %s4271_s4 = inlined_call_operand.hbm [shape: f32[32,256], index: 4, kind: input, shape index: {}]   ;;  %s4272_s5 = inlined_call_operand.vmem [shape: f32[1,256], index: 5, kind: input, shape index: {}]   ;;  %s4273_s6 = inlined_call_operand.hbm [shape: f32[64,256], index: 6, kind: input, shape index: {}]   ;;  %s4274_s7 = inlined_call_operand.hbm [shape: f32[16,8,32], index: 7, kind: output, shape index: {0}]   ;;  %s4275_s8 = inlined_call_operand.hbm [shape: f32[16,8,32], index: 8, kind: output, shape index: {1}]   ;;  %s4276_s9 = inlined_call_operand.hbm [shape: f32[8,64], index: 9, kind: output, shape index: {2}]   ;;  %s4277_s10 = inlined_call_operand.hbm [shape: f32[8,64], index: 10, kind: output, shape index: {3}]  }
   0x1   :  { %4295 = sst [smem:[#allocation32_spill]] %s4267_s0 }
   0x2   :  { %4296 = sst [smem:[#allocation33_spill]] %s4268_s1 }
   0x3   :  { %4297 = sst [smem:[#allocation34_spill]] %s4269_s2 }
   0x4   :  { %4298 = sst [smem:[#allocation35_spill]] %s4274_s7 }
   0x5   :  { %4299 = sst [smem:[#allocation36_spill]] %s4275_s8 }
   0x6   :  { %4300 = sst [smem:[#allocation37_spill]] %s4276_s9 }
   0x7   :  { %4301 = sst [smem:[#allocation38_spill]] %s4277_s10 }
   0x8   :  { %16 = vsyncpa [#allocation7], 0 }
   0x9   :  { %18 = vsyncpa [#allocation7 + $0x1], 0 }
   0xa   :  { %19 = vsyncpa [#allocation10], 0 }
   0xb   :  { %21 = vsyncpa [#allocation10 + $0x1], 0 }
   0xc   :  { %22 = vsyncpa [#allocation13], 0 }
   0xd   :  { %23 = vsyncpa [#allocation8], 0 }
   0xe   :  { %25 = vsyncpa [#allocation8 + $0x1], 0 }
   0xf   :  { %26 = vsyncpa [#allocation17], 0 }
  0x10   :  { %28 = vsyncpa [#allocation17 + $0x1], 0 }
  0x11   :  { %29 = vsyncpa [#allocation20], 0  ;;  %s3267_s13 = smov 0   ;;  %s3269_s14 = smov 0  }
  0x12   :  { %s3271_s15 = smov 0   ;;  %s3273_s16 = smov 0  }
  0x13   :  { %s3275_s17 = smov 0   ;;  %s3277_s18 = smov 0  }
  0x14   :  { %s3279_s19 = smov 0  }
  0x15 LB: > { %4302 = sst [smem:[#allocation29_spill]] %s3178_s16  ;;  %s3301_s20 = sadd.s32 4294967295, %s3190_s19   ;;  %s3190_s19 = sphi %s3279_s19, %s4363_s19   ;;  %s3186_s18 = sphi %s3277_s18, %s4362_s18   ;;  %s3182_s17 = sphi %s3275_s17, %s4361_s17   ;;  %s3178_s16 = sphi %s3273_s16, %s4360_s16   ;;  %s3174_s15 = sphi %s3271_s15, %s4359_s15   ;;  %s3170_s14 = sphi %s3269_s14, %s4358_s14   ;;  %s3166_s13 = sphi %s3267_s13, %s4357_s13  }
  0x16   : > { %s4278_s21 = sadd.s32 4294967294, %s3190_s19   ;;  %p76_p0 = scmp.ne.s32.totalorder %s3182_s17, %s3178_s16 }
  0x17   : > { %p4283_p1 = scmp.eq.s32.totalorder %s3301_s20, 0  ;;  %p104_p2 = scmp.ne.s32.totalorder %s3170_s14, %s3166_s13 }
  0x18   : > { %p218_p5 = scmp.eq.s32.totalorder %s4278_s21, 1  ;;  %p2334_p7 = scmp.ge.s32.totalorder %s3190_s19, 1 }
  0x19   : > { %p3311_p4 = por %p4283_p1, %p76_p0  ;;  %p3319_p6 = por %p104_p2, %p4283_p1 }
  0x1a   : > { %p3324_p8 = por %p218_p5, %p76_p0  ;;  %p3328_p9 = por %p218_p5, %p104_p2 }
  0x1b   : > { %s4303_s22 = scalar_select %p3311_p4, 1, 0 }
  0x1c   : > { %s4304_s23 = scalar_select %p3319_p6, 1, 0 }
  0x1d   : > { %s4305_s24 = scalar_select %p3324_p8, 1, 0 }
  0x1e   : > { %s4307_s25 = scalar_select %p3328_p9, 1, 0 }
  0x1f   : > { %4306 = sst [smem:[#allocation30_spill]] %s4305_s24  ;;  %p295_p10 = scmp.lt.s32.totalorder %s3190_s19, 3 }
  0x20   : > { %4308 = sst [smem:[#allocation31_spill]] %s4307_s25  ;;  %s3192_s27 = smov [#allocation11]  }
  0x21   : > { %p3334_p12 = pnand %p2334_p7, %p295_p10  ;;  %s310_s28 = sshll.u32 %s3192_s27, 4  ;;  %s3338_s28 = int_to_ptr.vmem [resolvable:$true] %s310_s28 }
  0x22   : > { %s3193_s30 = smov [#allocation12]   ;;  %s3194_s12 = smov [#allocation14]  }
  0x23   : > { %p2646_p13 = pneg %p3334_p12  ;;  %s323_s11 = sshll.u32 %s3193_s30, 4  ;;  %s3349_s11 = int_to_ptr.vmem [resolvable:$true] %s323_s11 }
  0x24   : > { %s339_s13 = sshll.u32 %s3194_s12, 4  ;;  %s2852_s25 = scalar_lea.hbm %s4270_s3, 1024  ;;  %s3351_s13 = int_to_ptr.vmem [resolvable:$true] %s339_s13 }
  0x25   : > { %p3345_p3 = pnand %p2646_p13, %p4283_p1  ;;  %p2853_p2 = scmp.ne.s32.totalorder %s4270_s3, %s2852_s25 }
  0x26   : > { %p2859_p13 = scmp.lt.u32.totalorder %s2852_s25, %s4270_s3 }
  0x27   : > { %p3361_p5 = pneg %p3345_p3 }
  0x29   : > { %p2855_p7 = pnand %p3361_p5, %p2853_p2 }
  0x2b   : > { %p2856_p10 = pneg %p2855_p7 }
  0x2d   : > { %p2861_p0 = pnand %p2859_p13, %p2856_p10 }
  0x2f   : > { %2864 = shalt.err (!%p2861_p0)
}
  0x30   : > { %s2865_s16 = scalar_lea.vmem %s3338_s28, 1024  ;;  %p2873_p8 = scmp.lt.s32.totalorder %s3338_s28, %s3338_s28 }
  0x31   : > { %p2866_p11 = scmp.ne.s32.totalorder %s3338_s28, %s2865_s16  ;;  %p2874_p6 = scmp.lt.s32.totalorder %s2865_s16, %s2865_s16 }
  0x33   : > { %p2868_p1 = pnand %p2866_p11, %p3361_p5  ;;  %p2875_p2 = por %p2874_p6, %p2873_p8 }
  0x35   : > { %p2869_p9 = pneg %p2868_p1 }
  0x37   : > { %p2876_p7 = pnand %p2875_p2, %p2869_p9 }
  0x39   : > { %2879 = shalt.err (!%p2876_p7)
}
  0x3a   : > { %s3195_s21 = smov 256   ;;  %s3196_s24 = smov 16  }
  0x3b   : > { %2649 = dma.hbm_to_vmem [thread:$0]  (!%p3345_p3), %s4270_s3, 1024, %s3338_s28, [#allocation10], %s3195_s21, %s3195_s21, %s3196_s24  }
  0x3c   : > { %s2880_s16 = scalar_lea.hbm %s4271_s4, 1024 }
  0x3d   : > { %p2881_p1 = scmp.ne.s32.totalorder %s4271_s4, %s2880_s16  ;;  %p2887_p9 = scmp.lt.u32.totalorder %s2880_s16, %s4271_s4 }
  0x3f   : > { %p2883_p6 = pnand %p2881_p1, %p3361_p5 }
  0x41   : > { %p2884_p8 = pneg %p2883_p6 }
  0x43   : > { %p2889_p11 = pnand %p2887_p9, %p2884_p8 }
  0x45   : > { %2892 = shalt.err (!%p2889_p11)
}
  0x46   : > { %s2893_s28 = scalar_lea.vmem %s3349_s11, 1024  ;;  %p2901_p2 = scmp.lt.s32.totalorder %s3349_s11, %s3349_s11 }
  0x47   : > { %p2894_p0 = scmp.ne.s32.totalorder %s3349_s11, %s2893_s28  ;;  %p2902_p7 = scmp.lt.s32.totalorder %s2893_s28, %s2893_s28 }
  0x49   : > { %p2896_p10 = pnand %p2894_p0, %p3361_p5  ;;  %p2903_p1 = por %p2902_p7, %p2901_p2 }
  0x4b   : > { %p2897_p13 = pneg %p2896_p10 }
  0x4d   : > { %p2904_p6 = pnand %p2903_p1, %p2897_p13 }
  0x4f   : > { %2907 = shalt.err (!%p2904_p6)
}
  0x50   : > { %2652 = dma.hbm_to_vmem [thread:$0]  (!%p3345_p3), %s4271_s4, 1024, %s3349_s11, [#allocation13], %s3195_s21, %s3195_s21, %s3196_s24  }
  0x51   : > { %s2908_s25 = scalar_lea.hbm %s4273_s6, 2048 }
  0x52   : > { %p2909_p8 = scmp.ne.s32.totalorder %s4273_s6, %s2908_s25  ;;  %p2915_p0 = scmp.lt.u32.totalorder %s2908_s25, %s4273_s6 }
  0x54   : > { %p2911_p9 = pnand %p2909_p8, %p3361_p5 }
  0x56   : > { %p2912_p11 = pneg %p2911_p9 }
  0x58   : > { %p2917_p10 = pnand %p2915_p0, %p2912_p11 }
  0x5a   : > { %2920 = shalt.err (!%p2917_p10)
}
  0x5b   : > { %s2921_s11 = scalar_lea.vmem %s3351_s13, 2048  ;;  %p2929_p1 = scmp.lt.s32.totalorder %s3351_s13, %s3351_s13 }
  0x5c   : > { %p2922_p13 = scmp.ne.s32.totalorder %s3351_s13, %s2921_s11  ;;  %p2930_p6 = scmp.lt.s32.totalorder %s2921_s11, %s2921_s11 }
  0x5e   : > { %p2924_p2 = pnand %p2922_p13, %p3361_p5  ;;  %p2931_p8 = por %p2930_p6, %p2929_p1 }
  0x60   : > { %p2925_p7 = pneg %p2924_p2 }
  0x62   : > { %p2932_p9 = pnand %p2931_p8, %p2925_p7 }
  0x64   : > { %2935 = shalt.err (!%p2932_p9)
}
  0x65   : > { %2655 = dma.hbm_to_vmem [thread:$0]  (!%p3345_p3), %s4273_s6, 2048, %s3351_s13, [#allocation13], %s3195_s21, %s3195_s21, %s3196_s24  }
  0x66   : > { %p4289_p5 = scmp.eq.s32.totalorder %s3190_s19, 0  ;;  %p4288_p11 = scmp.lt.s32.totalorder %s3190_s19, 2 }
  0x67   : > { %s63_s10 = sadd.s32 1, %s3186_s18  ;;  %p70_p0 = scmp.ne.s32.totalorder %s3186_s18, %s3182_s17 }
  0x68   : > { %s353_s29 = sand.u32 1, %s3186_s18   ;;  %s2422_s7 = sshll.u32 %s3190_s19, 10 }
  0x69   : > { %p72_p10 = por %p4289_p5, %p70_p0  ;;  %p4312_p13 = scmp.eq.s32.totalorder %s3301_s20, 1 }
  0x6a   : > { %s2339_s9 = sshll.u32 %s353_s29, 6  ;;  %s4314_s1 = sld [smem:[#allocation33_spill]] }
  0x6b   : > { %p3448_p2 = por %p4312_p13, %p70_p0  ;;  %s357_s13 = scalar_lea.vmem [#allocation6], %s2339_s9 }
  0x6c   : > { %s364_s21 = sshll.u32 %s357_s13, 4  ;;  %p3459_p3 = pnand %p4288_p11, %p72_p10  ;;  %s3463_s21 = int_to_ptr.vmem [resolvable:$true] %s364_s21 }
  0x6d   : > { %s4313_s8 = scalar_select %p3448_p2, 1, 0 }
  0x6e   : > { %s3465_s12 = scalar_lea.sflag [#allocation7], %s353_s29  ;;  %p2938_p1 = pneg %p3459_p3 }
  0x70   : > { %s3455_s30 = scalar_lea.hbm %s4314_s1, %s2422_s7  ;;  %s2941_s0 = scalar_lea.hbm %s4314_s1, 2048 }
  0x71   : > { %s2936_s16 = scalar_lea.hbm %s3455_s30, 1024  ;;  %p2942_p9 = scmp.lt.u32.totalorder %s3455_s30, %s4314_s1 }
  0x72   : > { %p2937_p7 = scmp.ne.s32.totalorder %s3455_s30, %s2936_s16  ;;  %p2943_p0 = scmp.lt.u32.totalorder %s2941_s0, %s2936_s16 }
  0x73   : > { %p2945_p13 = scmp.lt.u32.totalorder %s2936_s16, %s3455_s30 }
  0x74   : > { %p2939_p6 = pnand %p2938_p1, %p2937_p7  ;;  %p2944_p10 = por %p2943_p0, %p2942_p9 }
  0x76   : > { %p2940_p8 = pneg %p2939_p6  ;;  %p2946_p11 = por %p2945_p13, %p2944_p10 }
  0x78   : > { %p2947_p5 = pnand %p2946_p11, %p2940_p8 }
  0x7a   : > { %2950 = shalt.err (!%p2947_p5)
}
  0x7b   : > { %s2951_s29 = scalar_lea.vmem %s3463_s21, 1024  ;;  %s3197_s25 = smov [#allocation6]  }
  0x7c   : > { %p2952_p7 = scmp.ne.s32.totalorder %s3463_s21, %s2951_s29  ;;  %s2956_s27 = sshll.u32 %s3197_s25, 4  ;;  %s2957_s27 = int_to_ptr.vmem [resolvable:$false] %s2956_s27 }
  0x7d   : > { %s2958_s13 = scalar_lea.vmem %s2957_s27, 2048  ;;  %p2959_p4 = scmp.lt.s32.totalorder %s3463_s21, %s2957_s27 }
  0x7e   : > { %p2954_p6 = pnand %p2952_p7, %p2938_p1  ;;  %p2960_p9 = scmp.lt.s32.totalorder %s2958_s13, %s2951_s29 }
  0x80   : > { %p2955_p2 = pneg %p2954_p6  ;;  %p2961_p0 = por %p2960_p9, %p2959_p4 }
  0x82   : > { %p2962_p10 = pnand %p2961_p0, %p2955_p2 }
  0x84   : > { %2965 = shalt.err (!%p2962_p10)
}
  0x85   : > { %s4292_s16 = smov 128   ;;  %s4293_s11 = smov 8  }
  0x86   : > { %2659 = dma.hbm_to_vmem [thread:$0]  (!%p3459_p3), %s3455_s30, 1024, %s3463_s21, %s3465_s12, %s4292_s16, %s4292_s16, %s4293_s11  }
  0x87   : > { %s3497_s28 = sadd.s32 1, %s3190_s19   ;;  %s86_s7 = ssub.s32 1, %s3190_s19 }
  0x88   : > { %s60_s0 = ssub.s32 %s3190_s19, %s3497_s28  ;;  %s87_s9 = ssub.s32 1, %s3497_s28 }
  0x89   : > { %p61_p4 = scmp.eq.s32.totalorder %s60_s0, 0  ;;  %s91_s29 = sadd.s32 1, %s3174_s15 }
  0x8a   : > { %s88_s27 = ssub.s32 %s86_s7, %s87_s9  ;;  %p98_p5 = scmp.ne.s32.totalorder %s3174_s15, %s3170_s14 }
  0x8b   : > { %s3507_s25 = scalar_select %p61_p4, %s3186_s18, %s63_s10  }
  0x8c   : > { %p89_p11 = scmp.eq.s32.totalorder %s88_s27, 0  ;;  %s374_s24 = sand.u32 1, %s3190_s19  }
  0x8d   : > { %p4316_p2 = scmp.eq.s32.totalorder %s3190_s19, 0  ;;  %p4317_p3 = scmp.eq.s32.totalorder %s3301_s20, 1 }
  0x8e   : > { %s3521_s21 = scalar_select %p89_p11, %s3174_s15, %s91_s29  }
  0x8f   : > { %p100_p1 = por %p98_p5, %p4316_p2  ;;  %p3516_p8 = por %p4317_p3, %p98_p5 }
  0x90   : > { %s376_s12 = sand.u32 1, %s3174_s15   ;;  %s2423_s0 = sshll.u32 %s86_s7, 10 }
  0x91   : > { %s4318_s30 = scalar_select %p3516_p8, 1, 0 }
  0x92   : > { %s2342_s13 = sshll.u32 %s376_s12, 6  ;;  %s4319_s2 = sld [smem:[#allocation34_spill]] }
  0x93   : > { %s378_s9 = scalar_lea.vmem [#allocation9], %s2342_s13  ;;  %p4320_p13 = scmp.lt.s32.totalorder %s3190_s19, 2 }
  0x94   : > { %s386_s27 = sshll.u32 %s378_s9, 4  ;;  %s3537_s7 = scalar_lea.sflag [#allocation10], %s374_s24  ;;  %s3535_s27 = int_to_ptr.vmem [resolvable:$true] %s386_s27 }
  0x95   : > { %p3531_p7 = pnand %p4320_p13, %p100_p1 }
  0x97   : > { %p2968_p9 = pneg %p3531_p7 }
  0x98   : > { %s3527_s10 = scalar_lea.hbm %s4319_s2, %s2423_s0  ;;  %s2971_s12 = scalar_lea.hbm %s4319_s2, 2048 }
  0x99   : > { %s2966_s16 = scalar_lea.hbm %s3527_s10, 1024  ;;  %p2972_p4 = scmp.lt.u32.totalorder %s3527_s10, %s4319_s2 }
  0x9a   : > { %p2967_p6 = scmp.ne.s32.totalorder %s3527_s10, %s2966_s16  ;;  %p2973_p5 = scmp.lt.u32.totalorder %s2971_s12, %s2966_s16 }
  0x9b   : > { %p2975_p2 = scmp.lt.u32.totalorder %s2966_s16, %s3527_s10 }
  0x9c   : > { %p2969_p0 = pnand %p2968_p9, %p2967_p6  ;;  %p2974_p11 = por %p2973_p5, %p2972_p4 }
  0x9e   : > { %p2970_p10 = pneg %p2969_p0  ;;  %p2976_p1 = por %p2975_p2, %p2974_p11 }
  0xa0   : > { %p2977_p3 = pnand %p2976_p1, %p2970_p10 }
  0xa2   : > { %2980 = shalt.err (!%p2977_p3)
}
  0xa3   : > { %s2981_s24 = scalar_lea.vmem %s3535_s27, 1024  ;;  %s3200_s9 = smov [#allocation9]  }
  0xa4   : > { %p2982_p13 = scmp.ne.s32.totalorder %s3535_s27, %s2981_s24  ;;  %s2986_s11 = sshll.u32 %s3200_s9, 4  ;;  %s2987_s11 = int_to_ptr.vmem [resolvable:$false] %s2986_s11 }
  0xa5   : > { %s2988_s29 = scalar_lea.vmem %s2987_s11, 2048  ;;  %p2989_p8 = scmp.lt.s32.totalorder %s3535_s27, %s2987_s11 }
  0xa6   : > { %p2984_p6 = pnand %p2982_p13, %p2968_p9  ;;  %p2990_p4 = scmp.lt.s32.totalorder %s2988_s29, %s2981_s24 }
  0xa8   : > { %p2985_p0 = pneg %p2984_p6  ;;  %p2991_p5 = por %p2990_p4, %p2989_p8 }
  0xaa   : > { %p2992_p11 = pnand %p2991_p5, %p2985_p0 }
  0xac   : > { %2995 = shalt.err (!%p2992_p11)
}
  0xad   : > { %s4322_s16 = smov 8   ;;  %s4323_s12 = smov 128  }
  0xae   : > { %2662 = dma.hbm_to_vmem [thread:$0]  (!%p3531_p7), %s3527_s10, 1024, %s3535_s27, %s3537_s7, %s4323_s12, %s4323_s12, %s4322_s16  }
  0xaf   : > { %398 = sbr.rel (%p3334_p12) target bundleno = 5233 (0x1471), region = 48  ;;  %s3571_s13 = sand.u32 (!%p3334_p12), 1, %s3182_s17  }
  0xb0   : > { %s2346_s0 = sshll.u32 (!%p3334_p12), %s3571_s13, 6  ;;  %s401_s24 = scalar_lea.sflag (!%p3334_p12), [#allocation7], %s3571_s13 }
  0xb1   : > { %s3575_s9 = scalar_lea.vmem (!%p3334_p12), [#allocation6], %s2346_s0  ;;  %p4324_p8 = scmp.ne.s32.totalorder (!%p3334_p12), %s4303_s22, 0 }
  0xb6   : > { %3133 = dma.done.wait (%p4324_p8), %s401_s24, 1024  }
  0xb7   : > { %3135 = vsyncadd (%p4324_p8), %s401_s24, 4294966272  ;;  %s409_s1 = sand.u32 1, %s3301_s20   ;;  %s411_s26 = sand.u32 1, %s3170_s14  }
  0xb8   : > { %s2347_s10 = sshll.u32 %s411_s26, 6  ;;  %s410_s27 = scalar_lea.sflag [#allocation10], %s409_s1 }
  0xb9   : > { %s3585_s7 = scalar_lea.vmem [#allocation9], %s2347_s10  ;;  %p4325_p12 = scmp.ne.s32.totalorder %s4304_s23, 0 }
  0xbb   : > { %3137 = dma.done.wait (%p4325_p12), %s410_s27, 1024  }
  0xbc   : > { %3139 = vsyncadd (%p4325_p12), %s410_s27, 4294966272  ;;  %p4326_p7 = scmp.eq.s32.totalorder %s3301_s20, 0 }
  0xbe   : > { %3141 = dma.done.wait (%p4326_p7), [#allocation10], 1024   ;;  %p4327_p9 = pmov %p4326_p7 }
  0xbf   : > { %p4328_p10 = pmov %p4326_p7 }
  0xc0   : > { %3143 = vsyncadd (%p4327_p9), [#allocation10], 4294966272 }
  0xc1   : > { %3145 = dma.done.wait (%p4328_p10), [#allocation13], 3072   ;;  %p4329_p2 = pmov %p4326_p7 }
  0xc2   : > { %s3599_s22 = scalar_lea.vmem [#allocation15], %s2346_s0  ;;  %s3601_s11 = scalar_lea.vmem [#allocation16], %s2347_s10 }
  0xc3   : > { %3147 = vsyncadd (%p4329_p2), [#allocation13], 4294964224  ;;  %p4330_p1 = scmp.ne.s32.totalorder %s3301_s20, 0 }
  0xc4   : > { %vm482_vm0 = vcmask (!%p4330_p1), 523264   ;;  %v3201_v0 = vmov (!%p4330_p1), 0.0  }
  0xc5   : > { %481 = sbr.rel (%p4330_p1) target bundleno = 204 (0xcc), region = 72  ;;  %483 = vst.msk [vmem:[#allocation4] sm:$0xff] (!%p4330_p1), %vm482_vm0, %v3201_v0  ;;  %484 = vst.msk [vmem:[#allocation5] sm:$0xff] (!%p4330_p1), %vm482_vm0, %v3201_v0 }
  0xcc PF: > { %v519_v1 = vld [vmem:[#allocation11 + $0x8] sm:$0xff]  ;;  %v521_v2 = vld [vmem:[#allocation11 + $0x18] sm:$0xff]  ;;  %v518_v3 = vld [vmem:[#allocation11] sm:$0xff]  ;;  %v3202_v8 = vmov 0.0   ;;  %vm526_vm1 = vcmask 261120   ;;  %vm883_vm2 = vcmask 523264  }
  0xcd   : > { %v2426_v4 = vpack.c.bf16 %v521_v2, %v519_v1  ;;  %v520_v5 = vld [vmem:[#allocation11 + $0x10] sm:$0xff]  ;;  %v523_v6 = vld [vmem:[#allocation11 + $0x28] sm:$0xff]  ;;  %v525_v7 = vld [vmem:[#allocation11 + $0x38] sm:$0xff]  ;;  %615 = vmatprep.mubr.f32.mxu1 %v3202_v8  ;;  %1257 = vmatprep.mubr.f32.mxu0 %v3202_v8  ;;  %s3204_s16 = smov 64   ;;  %s4331_s24 = sld [smem:[#allocation32_spill]] }
  0xce   : > { %v2428_v9 = vpack.c.bf16 %v520_v5, %v518_v3  ;;  %v2430_v10 = vpack.c.bf16 %v525_v7, %v523_v6  ;;  %v522_v11 = vld [vmem:[#allocation11 + $0x20] sm:$0xff]  ;;  %v524_v12 = vld [vmem:[#allocation11 + $0x30] sm:$0xff]  ;;  %v665_v13 = vld [vmem:[#allocation12 + $0x8] sm:$0xff]  ;;  %v811_v3 = vlaneseq  ;;  %p2409_p3 = scmp.ne.s32.totalorder %s3301_s20, 1 }
  0xcf   : > { %2427 = vmatprep.subr.bf16.mxu1 %v2426_v4  ;;  %v667_v14 = vld [vmem:[#allocation12 + $0x18] sm:$0xff]  ;;  %v2432_v15 = vpack.c.bf16 %v524_v12, %v522_v11  ;;  %v664_v17 = vld [vmem:[#allocation12] sm:$0xff]  ;;  %v666_v18 = vld [vmem:[#allocation12 + $0x10] sm:$0xff] }
  0xd0   : > { %2429 = vmatpush1.bf16.msra.mxu1 %v2428_v9  ;;  %v2434_v16 = vpack.c.bf16 %v667_v14, %v665_v13  ;;  %v669_v19 = vld [vmem:[#allocation12 + $0x28] sm:$0xff]  ;;  %v671_v20 = vld [vmem:[#allocation12 + $0x38] sm:$0xff]  ;;  %v502_v21 = vld [vmem:[%s3575_s9] sm:$0xff]  ;;  %v2436_v22 = vpack.c.bf16 %v666_v18, %v664_v17  ;;  %v812_v4 = vshrl.u32 %v811_v3, 7 }
  0xd1   : > { %2431 = vmatprep.subr.bf16.mxu1 %v2430_v10  ;;  %v668_v23 = vld [vmem:[#allocation12 + $0x20] sm:$0xff]  ;;  %v487_v24 = vld [vmem:[#allocation14 + $0x8] sm:$0xff]  ;;  %v489_v25 = vld [vmem:[#allocation14 + $0x18] sm:$0xff]  ;;  %v2438_v26 = vpack.c.bf16 %v671_v20, %v669_v19 }
  0xd2   : > { %v670_v27 = vld [vmem:[#allocation12 + $0x30] sm:$0xff]  ;;  %v3608_v28 = vpack.c.bf16 %v489_v25, %v487_v24  ;;  %v486_v29 = vld [vmem:[#allocation14] sm:$0xff]  ;;  %v491_v31 = vld [vmem:[#allocation14 + $0x28] sm:$0xff]  ;;  %v813_v5 = vsub.s32 0, %v812_v4 }
  0xd3   : > { %v488_v30 = vld [vmem:[#allocation14 + $0x10] sm:$0xff]  ;;  %v493_v32 = vld [vmem:[#allocation14 + $0x38] sm:$0xff]  ;;  %v503_v34 = vld [vmem:[%s3575_s9 + $0x8] sm:$0xff]  ;;  %v2440_v35 = vpack.c.bf16 %v670_v27, %v668_v23 }
  0xd4   : > { %2433 = vmatpush1.bf16.msra.mxu1 %v2432_v15  ;;  %v3611_v33 = vpack.c.bf16 %v488_v30, %v486_v29  ;;  %2475 = vmatprep.subr.bf16.mxu0 %v3608_v28  ;;  %v3616_v36 = vpack.c.bf16 %v493_v32, %v491_v31  ;;  %v490_v37 = vld [vmem:[#allocation14 + $0x20] sm:$0xff]  ;;  %v492_v38 = vld [vmem:[#allocation14 + $0x30] sm:$0xff]  ;;  %v495_v39 = vld [vmem:[#allocation14 + $0x48] sm:$0xff] }
  0xd5   : > { %2435 = vmatprep.subr.bf16.mxu1 %v2434_v16  ;;  %v497_v40 = vld [vmem:[#allocation14 + $0x58] sm:$0xff]  ;;  %v3621_v41 = vpack.c.bf16 %v492_v38, %v490_v37  ;;  %v504_v42 = vld [vmem:[%s3575_s9 + $0x10] sm:$0xff]  ;;  %v494_v44 = vld [vmem:[#allocation14 + $0x40] sm:$0xff] }
  0xd6   : > { %2477 = vmatpush1.bf16.msra.mxu0 %v3611_v33  ;;  %v3625_v43 = vpack.c.bf16 %v497_v40, %v495_v39  ;;  %v496_v45 = vld [vmem:[#allocation14 + $0x50] sm:$0xff]  ;;  %v499_v46 = vld [vmem:[#allocation14 + $0x68] sm:$0xff]  ;;  %v501_v47 = vld [vmem:[#allocation14 + $0x78] sm:$0xff] }
  0xd7   : > { %2354 = vmatmul.mubr.msk.f32.vlgmr.msra.gmra.mrb[0].mxu1 %vm526_vm1, %v502_v21  ;;  %2479 = vmatprep.subr.bf16.mxu0 %v3616_v36  ;;  %v3631_v48 = vpack.c.bf16 %v496_v45, %v494_v44  ;;  %v505_v49 = vld [vmem:[%s3575_s9 + $0x18] sm:$0xff]  ;;  %v3635_v50 = vpack.c.bf16 %v501_v47, %v499_v46  ;;  %v498_v51 = vld [vmem:[#allocation14 + $0x60] sm:$0xff]  ;;  %v500_v52 = vld [vmem:[#allocation14 + $0x70] sm:$0xff]  ;;  %v817_v21 = vsub.s32 1, %v812_v4  ;;  %v3745_v46 = vand.u32 127, %v811_v3 }
  0xd8   : > { %2437 = vmatpush1.bf16.msra.mxu1 %v2436_v22  ;;  %621 = vmatprep.mubr.f32.mxu1 %v3202_v8  ;;  %v3640_v53 = vpack.c.bf16 %v500_v52, %v498_v51  ;;  %v506_v54 = vld [vmem:[%s3575_s9 + $0x20] sm:$0xff]  ;;  %v507_v55 = vld [vmem:[%s3575_s9 + $0x28] sm:$0xff]  ;;  %v508_v56 = vld [vmem:[%s3575_s9 + $0x30] sm:$0xff] }
  0xd9   : > { %2439 = vmatprep.subr.bf16.mxu1 %v2438_v26  ;;  %v509_v57 = vld [vmem:[%s3575_s9 + $0x38] sm:$0xff]  ;;  %v510_v58 = vld [vmem:[%s3585_s7] sm:$0xff]  ;;  %v511_v59 = vld [vmem:[%s3585_s7 + $0x8] sm:$0xff]  ;;  %v3203_v26 = vmov 0   ;;  %s3749_s9 = sshll.u32 %s3301_s20, 3  ;;  %vm872_vm3 = vcmp.lt.s32.totalorder %v3745_v46, 32 }
  0xda   : > { %2481 = vmatpush1.bf16.msra.mxu0 %v3621_v41  ;;  %v512_v60 = vld [vmem:[%s3585_s7 + $0x10] sm:$0xff]  ;;  %v513_v61 = vld [vmem:[%s3585_s7 + $0x18] sm:$0xff]  ;;  %v514_v62 = vld [vmem:[%s3585_s7 + $0x20] sm:$0xff]  ;;  %2754 = vset.pattern.permute.xlu1 %v3203_v26  ;;  %s1788_s26 = sadd.s32 6, %s3749_s9  ;;  %s1789_s10 = ssub.s32 9, %s3749_s9 }
  0xdb   : > { %2355 = vmatmul.mubr.msk.f32.gmra.mrb[2].mxu1 %vm526_vm1, %v503_v34  ;;  %2483 = vmatprep.subr.bf16.mxu0 %v3625_v43  ;;  %v515_v63 = vld [vmem:[%s3585_s7 + $0x28] sm:$0xff]  ;;  %v516_v0 = vld [vmem:[%s3585_s7 + $0x30] sm:$0xff]  ;;  %v517_v1 = vld [vmem:[%s3585_s7 + $0x38] sm:$0xff]  ;;  %v3754_v47 = vstv %s1788_s26  ;;  %s875_s27 = ssub.s32 15, %s3749_s9  ;;  %s1028_s7 = sadd.s32 1, %s3749_s9 }
  0xdc   : > { %627 = vmatprep.mubr.f32.mxu1 %v3202_v8  ;;  %2441 = vmatpush1.bf16.msra.mxu1 %v2440_v35  ;;  %v3689_v2 = vld [vmem:[#allocation4] sm:$0xff]  ;;  %v874_v29 = vld [vmem:[#allocation5] sm:$0xff]  ;;  %s1029_s23 = ssub.s32 14, %s3749_s9  ;;  %s1180_s29 = sadd.s32 2, %s3749_s9 }
  0xdd   : > { %2443 = vmatprep.subr.bf16.mxu1 %v3608_v28  ;;  %v809_v6 = vld [vmem:[%s4272_s5] sm:$0x3]  ;;  %2755 = vset.pattern.permute.xlu0 %v3203_v26  ;;  %s1181_s12 = ssub.s32 13, %s3749_s9  ;;  %s1332_s0 = sadd.s32 3, %s3749_s9 }
  0xde   : > { %2485 = vmatpush1.bf16.msra.mxu0 %v3631_v48  ;;  %v3704_v7 = vrot.slane %v809_v6, %v813_v5  ;;  %v3730_v22 = vrot.slane %v809_v6, %v817_v21  ;;  %v3742_v39 = vld [vmem:[%s4331_s24] sm:$0xff]  ;;  %s1333_s24 = ssub.s32 12, %s3749_s9  ;;  %s1484_s26 = sadd.s32 4, %s3749_s9 }
  0xdf   : > { %2356 = vmatmul.mubr.msk.f32.gmra.mrb[4].mxu1 %vm526_vm1, %v504_v42  ;;  %2487 = vmatprep.subr.bf16.mxu0 %v3635_v50 }
  0xe0   : > { %633 = vmatprep.mubr.f32.mxu1 %v3202_v8 }
  0xe2   : > { %2489 = vmatpush1.bf16.msra.mxu0 %v3640_v53 }
  0xe3   : > { %2357 = vmatmul.mubr.msk.f32.gmra.mrb[6].mxu1 %vm526_vm1, %v505_v49  ;;  %2491 = vmatprep.subr.bf16.mxu0 %v3608_v28  ;;  %v3756_v49 = vstv %s1789_s10  ;;  %s1485_s10 = ssub.s32 11, %s3749_s9 }
  0xe4   : > { %639 = vmatprep.mubr.f32.mxu1 %v3202_v8  ;;  %v3762_v51 = vsel %vm872_vm3, %v3754_v47, %v3756_v49 }
  0xe7   : > { %2358 = vmatmul.mubr.msk.f32.gmra.mrb[8].mxu1 %vm526_vm1, %v506_v54 }
  0xe8   : > { %645 = vmatprep.mubr.f32.mxu1 %v3202_v8 }
  0xeb   : > { %2359 = vmatmul.mubr.msk.f32.gmra.mrb[10].mxu1 %vm526_vm1, %v507_v55  ;;  %v994_v55 = vstv %s3749_s9 }
  0xec   : > { %651 = vmatprep.mubr.f32.mxu1 %v3202_v8  ;;  %vm1001_vm0 = vcmp.lt.s32.totalorder %v994_v55, %v3742_v39 }
  0xef   : > { %2360 = vmatmul.mubr.msk.f32.gmra.mrb[12].mxu1 %vm526_vm1, %v508_v56  ;;  %v3767_v56 = vstv %s875_s27  ;;  %s1636_s27 = sadd.s32 5, %s3749_s9 }
  0xf0   : > { %657 = vmatprep.mubr.f32.mxu1 %v3202_v8  ;;  %vm1009_vm11 = vcmp.lt.s32.totalorder %v3767_v56, %v3742_v39 }
  0xf3   : > { %2361 = vmatmul.mubr.msk.f32.gmra.mrb[14].mxu1 %vm526_vm1, %v509_v57 }
  0xf4   : > { %760 = vmatprep.mubr.f32.mxu1 %v3202_v8 }
  0xfb   : > { %2362 = vmatmul.mubr.msk.f32.vlgmr.msra.gmra.mrb[14].mxu1 %vm526_vm1, %v510_v58 }
  0xfc   : > { %2445 = vmatpush1.bf16.msra.mxu1 %v3611_v33  ;;  %766 = vmatprep.mubr.f32.mxu1 %v3202_v8 }
  0xfd   : > { %2447 = vmatprep.subr.bf16.mxu1 %v3616_v36 }
  0xff   : > { %2363 = vmatmul.mubr.msk.f32.gmra.mrb[12].mxu1 %vm526_vm1, %v511_v59  ;;  %v996_v59 = vsel %vm872_vm3, %v994_v55, %v3767_v56 }
 0x100   : > { %772 = vmatprep.mubr.f32.mxu1 %v3202_v8  ;;  %2449 = vmatpush1.bf16.msra.mxu1 %v3621_v41 }
 0x101   : > { %2451 = vmatprep.subr.bf16.mxu1 %v3625_v43 }
 0x103   : > { %2364 = vmatmul.mubr.msk.f32.gmra.mrb[10].mxu1 %vm526_vm1, %v512_v60 }
 0x104   : > { %778 = vmatprep.mubr.f32.mxu1 %v3202_v8  ;;  %2453 = vmatpush1.bf16.msra.mxu1 %v3631_v48 }
 0x105   : > { %2455 = vmatprep.subr.bf16.mxu1 %v3635_v50 }
 0x107   : > { %2365 = vmatmul.mubr.msk.f32.gmra.mrb[8].mxu1 %vm526_vm1, %v513_v61 }
 0x108   : > { %784 = vmatprep.mubr.f32.mxu1 %v3202_v8  ;;  %2457 = vmatpush1.bf16.msra.mxu1 %v3640_v53 }
 0x109   : > { %2459 = vmatprep.subr.bf16.mxu1 %v3608_v28 }
 0x10b   : > { %2366 = vmatmul.mubr.msk.f32.gmra.mrb[6].mxu1 %vm526_vm1, %v514_v62 }
 0x10c   : > { %790 = vmatprep.mubr.f32.mxu1 %v3202_v8 }
 0x10f   : > { %2367 = vmatmul.mubr.msk.f32.gmra.mrb[4].mxu1 %vm526_vm1, %v515_v63 }
 0x110   : > { %796 = vmatprep.mubr.f32.mxu1 %v3202_v8 }
 0x113   : > { %2368 = vmatmul.mubr.msk.f32.gmra.mrb[2].mxu1 %vm526_vm1, %v516_v0 }
 0x114   : > { %802 = vmatprep.mubr.f32.mxu1 %v3202_v8 }
 0x117   : > { %2369 = vmatmul.mubr.msk.f32.gmra.mrb[0].mxu1 %vm526_vm1, %v517_v1 }
 0x118   : > { %951 = vmatprep.mubr.f32.mxu1 %v3202_v8 }
 0x11f   : > { %2371 = vmatmul.mubr.msk.f32.vlgmr.msra.gmra.mrb[0].mxu1 %vm883_vm2, %v3689_v2 }
 0x120   : > { %2461 = vmatpush1.bf16.msra.mxu1 %v3611_v33  ;;  %1105 = vmatprep.mubr.f32.mxu1 %v3202_v8 }
 0x121   : > { %2463 = vmatprep.subr.bf16.mxu1 %v3616_v36 }
 0x124   : > { %2465 = vmatpush1.bf16.msra.mxu1 %v3621_v41 }
 0x125   : > { %2467 = vmatprep.subr.bf16.mxu1 %v3625_v43 }
 0x128   : > { %2469 = vmatpush1.bf16.msra.mxu1 %v3631_v48 }
 0x129   : > { %2471 = vmatprep.subr.bf16.mxu1 %v3635_v50 }
 0x12c   : > { %2473 = vmatpush1.bf16.msra.mxu1 %v3640_v53 }
 0x1ce   : > { %v3706_v9 = vpop.f32.mrb[14].mxu1 }
 0x1cf   : > { %v3708_v10 = vpop.f32.mrb[15].mxu1 }
 0x1d2   : > { %v3710_v11 = vpop.f32.mrb[12].mxu1 }
 0x1d3   : > { %v3712_v12 = vpop.f32.mrb[13].mxu1 }
 0x1d6   : > { %v3714_v13 = vpop.f32.mrb[10].mxu1 }
 0x1d7   : > { %v3716_v14 = vpop.f32.mrb[11].mxu1 }
 0x1da   : > { %v3718_v15 = vpop.f32.mrb[8].mxu1 }
 0x1db   : > { %v3720_v16 = vpop.f32.mrb[9].mxu1 }
 0x1de   : > { %v3722_v17 = vpop.f32.mrb[6].mxu1 }
 0x1df   : > { %v3724_v18 = vpop.f32.mrb[7].mxu1 }
 0x1e2   : > { %v3726_v19 = vpop.f32.mrb[4].mxu1 }
 0x1e3   : > { %v3728_v20 = vpop.f32.mrb[5].mxu1 }
 0x1f2   : > { %v953_v23 = vpop.f32.mrb[0].mxu1 }
 0x1f3   : > { %v955_v24 = vpop.f32.mrb[1].mxu1  ;;  %v2570_v30 = vadd.f32 %v953_v23, %v3704_v7 }
 0x1f4   : > { %v2571_v25 = vadd.f32 %v955_v24, %v3730_v22 }
 0x1f5   : > { %v2372_v31 = vmul.f32 -1.442695, %v2570_v30 }
 0x1f6   : > { %2756 = vtanh.f32 %v2571_v25  ;;  %v2373_v54 = vmul.f32 -1.442695, %v2571_v25 }
 0x1f7   : > { %2758 = vpow2.f32 %v2372_v31 }
 0x200   : > { %v2757_v27 = vpop.eup %2756 }
 0x201   : > { %979 = vrot.lane.b32.xlu0 %v2757_v27, %s3204_s16  ;;  %v2759_v32 = vpop.eup %2758 }
 0x202   : > { %v966_v34 = vadd.f32 1.0, %v2759_v32 }
 0x204   : > { %2760 = vrcp.f32 %v966_v34 }
 0x205   : > { %974 = vrot.lane.b32.xlu0 %v874_v29, %s3204_s16 }
 0x20e   : > { %v2761_v35 = vpop.eup %2760 }
 0x273   : > { %v980_v37 = vpop.permute.xlu0 %979 }
 0x274   : > { %v982_v38 = vmul.f32 %v2761_v35, %v980_v37 }
 0x276   : > { %984 = vrot.lane.b32.xlu1 %v982_v38, %s3204_s16 }
 0x277   : > { %v975_v40 = vpop.permute.xlu0 %974 }
 0x278   : > { %v977_v42 = vmul.f32 %v2761_v35, %v975_v40 }
 0x27a   : > { %998 = vperm.xlu1 %2754, %v3742_v39  }
 0x2e8   : > { %v985_v44 = vpop.permute.xlu1 %984 }
 0x2e9   : > { %v987_v45 = vadd.f32 %v985_v44, %v977_v42  ;;  %v3791_v42 = vstv %s1028_s7  ;;  %v3793_v44 = vstv %s1029_s23  ;;  %s1637_s7 = ssub.s32 10, %s3749_s9  ;;  %s1941_s23 = ssub.s32 8, %s3749_s9 }
 0x2eb   : > { %2762 = vtanh.f32 %v987_v45  ;;  %1024 = vrot.lane.b32.xlu1 %v987_v45, %s3204_s16 }
 0x2ec   : > { %2764 = vpow2.f32 %v2373_v54 }
 0x2f5   : > { %v2763_v52 = vpop.eup %2762 }
 0x2f6   : > { %990 = vrot.lane.b32.xlu0 %v2763_v52, %s3204_s16  ;;  %v2765_v57 = vpop.eup %2764  ;;  %v1150_v52 = vsel %vm872_vm3, %v3791_v42, %v3793_v44 }
 0x2f7   : > { %v967_v60 = vadd.f32 1.0, %v2765_v57 }
 0x2f9   : > { %v3769_v58 = vpop.permute.xlu1 %998  ;;  %2766 = vrcp.f32 %v967_v60 }
 0x2fa   : > { %vm1000_vm4 = vcmp.lt.s32.totalorder %v996_v59, %v3769_v58  ;;  %vm1151_vm5 = vcmp.lt.s32.totalorder %v1150_v52, %v3769_v58  ;;  %vm1911_vm10 = vcmp.lt.s32.totalorder %v3762_v51, %v3769_v58  ;;  %v1002_v51 = vsel %vm1001_vm0, 1, %v3203_v26 }
 0x303   : > { %v2767_v63 = vpop.eup %2766 }
 0x35d   : > { %v1025_v61 = vpop.permute.xlu1 %1024 }
 0x35e   : > { %v1027_v62 = vsel %vm1000_vm4, %v1025_v61, %v874_v29 }
 0x35f   : > { %1128 = vrot.lane.b32.xlu1 %v1027_v62, %s3204_s16 }
 0x368   : > { %v991_v0 = vpop.permute.xlu0 %990 }
 0x369   : > { %v3778_v1 = vmul.f32 %v2767_v63, %v991_v0  ;;  %v2576_v0 = vadd.f32 %v3730_v22, %v3728_v20 }
 0x36b   : > { %v1022_v3 = vsel %vm1000_vm4, %v3778_v1, %v3689_v2 }
 0x36c   : > { %2375 = vmatmul.mubr.msk.f32.vlgmr.msra.gmra.mrb[2].mxu1 %vm883_vm2, %v1022_v3 }
 0x3d1   : > { %v1129_v31 = vpop.permute.xlu1 %1128 }
 0x43f   : > { %v1107_v4 = vpop.f32.mrb[2].mxu1 }
 0x440   : > { %v1109_v5 = vpop.f32.mrb[3].mxu1  ;;  %v2572_v23 = vadd.f32 %v1107_v4, %v3704_v7 }
 0x441   : > { %v2573_v6 = vadd.f32 %v1109_v5, %v3730_v22 }
 0x442   : > { %v2376_v24 = vmul.f32 -1.442695, %v2572_v23 }
 0x443   : > { %2768 = vtanh.f32 %v2573_v6  ;;  %v2377_v38 = vmul.f32 -1.442695, %v2573_v6 }
 0x444   : > { %2770 = vpow2.f32 %v2376_v24 }
 0x44d   : > { %v2769_v21 = vpop.eup %2768 }
 0x44e   : > { %1133 = vrot.lane.b32.xlu0 %v2769_v21, %s3204_s16  ;;  %v2771_v25 = vpop.eup %2770 }
 0x44f   : > { %v1120_v27 = vadd.f32 1.0, %v2771_v25 }
 0x451   : > { %2772 = vrcp.f32 %v1120_v27 }
 0x45b   : > { %v2773_v2 = vpop.eup %2772 }
 0x45c   : > { %v1131_v32 = vmul.f32 %v2773_v2, %v1129_v31 }
 0x4c0   : > { %v1134_v29 = vpop.permute.xlu0 %1133 }
 0x4c1   : > { %v1136_v30 = vmul.f32 %v2773_v2, %v1134_v29 }
 0x4c3   : > { %1138 = vrot.lane.b32.xlu0 %v1136_v30, %s3204_s16 }
 0x535   : > { %v1139_v34 = vpop.permute.xlu0 %1138 }
 0x536   : > { %v1141_v35 = vadd.f32 %v1139_v34, %v1131_v32 }
 0x538   : > { %2774 = vtanh.f32 %v1141_v35  ;;  %1176 = vrot.lane.b32.xlu0 %v1141_v35, %s3204_s16 }
 0x539   : > { %2776 = vpow2.f32 %v2377_v38  ;;  %v3826_v38 = vstv %s1181_s12 }
 0x53a   : > { %vm1313_vm12 = vcmp.lt.s32.totalorder %v3826_v38, %v3742_v39 }
 0x542   : > { %v2775_v37 = vpop.eup %2774 }
 0x543   : > { %1144 = vrot.lane.b32.xlu1 %v2775_v37, %s3204_s16  ;;  %v2777_v40 = vpop.eup %2776  ;;  %v3824_v37 = vstv %s1180_s29  ;;  %s3205_s29 = smov 96  }
 0x544   : > { %v1121_v45 = vadd.f32 1.0, %v2777_v40  ;;  %vm1304_vm4 = vcmp.lt.s32.totalorder %v3824_v37, %v3742_v39 }
 0x546   : > { %2778 = vrcp.f32 %v1121_v45  ;;  %v1302_v45 = vsel %vm872_vm3, %v3824_v37, %v3826_v38 }
 0x547   : > { %vm1303_vm6 = vcmp.lt.s32.totalorder %v1302_v45, %v3769_v58 }
 0x550   : > { %v2779_v59 = vpop.eup %2778 }
 0x5aa   : > { %v1177_v54 = vpop.permute.xlu0 %1176 }
 0x5ab   : > { %v1179_v57 = vsel %vm1151_vm5, %v1177_v54, %v1027_v62  ;;  %v2574_v62 = vadd.f32 %v3704_v7, %v3726_v19 }
 0x5ac   : > { %1280 = vrot.lane.b32.xlu0 %v1179_v57, %s3204_s16 }
 0x5b5   : > { %v1145_v60 = vpop.permute.xlu1 %1144 }
 0x5b6   : > { %v3801_v61 = vmul.f32 %v2779_v59, %v1145_v60 }
 0x5b8   : > { %v1174_v63 = vsel %vm1151_vm5, %v3801_v61, %v1022_v3 }
 0x5b9   : > { %2380 = vmatmul.mubr.msk.f32.vlgmr.msra.gmra.mrb[0].mxu0 %vm883_vm2, %v1174_v63 }
 0x5ba   : > { %2493 = vmatpush1.bf16.msra.mxu0 %v3611_v33  ;;  %1409 = vmatprep.mubr.f32.mxu0 %v3202_v8 }
 0x5bb   : > { %2495 = vmatprep.subr.bf16.mxu0 %v3616_v36 }
 0x5be   : > { %2497 = vmatpush1.bf16.msra.mxu0 %v3621_v41 }
 0x5bf   : > { %2499 = vmatprep.subr.bf16.mxu0 %v3625_v43 }
 0x5c2   : > { %2501 = vmatpush1.bf16.msra.mxu0 %v3631_v48 }
 0x5c3   : > { %2503 = vmatprep.subr.bf16.mxu0 %v3635_v50 }
 0x5c6   : > { %2505 = vmatpush1.bf16.msra.mxu0 %v3640_v53 }
 0x5c7   : > { %2507 = vmatprep.subr.bf16.mxu0 %v3608_v28 }
 0x61e   : > { %v1281_v20 = vpop.permute.xlu0 %1280 }
 0x68c   : > { %v1259_v3 = vpop.f32.mrb[0].mxu0 }
 0x68d   : > { %v2575_v4 = vadd.f32 %v2574_v62, %v1259_v3  ;;  %v1261_v5 = vpop.f32.mrb[1].mxu0 }
 0x68e   : > { %v2577_v6 = vadd.f32 %v2576_v0, %v1261_v5 }
 0x68f   : > { %v2381_v23 = vmul.f32 -1.442695, %v2575_v4 }
 0x690   : > { %2780 = vtanh.f32 %v2577_v6  ;;  %v2382_v34 = vmul.f32 -1.442695, %v2577_v6 }
 0x691   : > { %2782 = vpow2.f32 %v2381_v23 }
 0x69a   : > { %v2781_v21 = vpop.eup %2780 }
 0x69b   : > { %1285 = vrot.lane.b32.xlu1 %v2781_v21, %s3204_s16  ;;  %v2783_v24 = vpop.eup %2782 }
 0x69c   : > { %v1272_v25 = vadd.f32 1.0, %v2783_v24 }
 0x69e   : > { %2784 = vrcp.f32 %v1272_v25 }
 0x6a8   : > { %v2785_v27 = vpop.eup %2784 }
 0x6a9   : > { %v1283_v29 = vmul.f32 %v2785_v27, %v1281_v20 }
 0x70d   : > { %v1286_v19 = vpop.permute.xlu1 %1285 }
 0x70e   : > { %v1288_v2 = vmul.f32 %v2785_v27, %v1286_v19 }
 0x710   : > { %1290 = vrot.lane.b32.xlu1 %v1288_v2, %s3204_s16 }
 0x782   : > { %v1291_v30 = vpop.permute.xlu1 %1290 }
 0x783   : > { %v1293_v31 = vadd.f32 %v1291_v30, %v1283_v29 }
 0x785   : > { %2786 = vtanh.f32 %v1293_v31  ;;  %1328 = vrot.lane.b32.xlu1 %v1293_v31, %s3204_s16 }
 0x786   : > { %2788 = vpow2.f32 %v2382_v34  ;;  %v3857_v34 = vstv %s1332_s0 }
 0x78f   : > { %v2787_v32 = vpop.eup %2786 }
 0x790   : > { %1296 = vrot.lane.b32.xlu0 %v2787_v32, %s3204_s16  ;;  %v2789_v35 = vpop.eup %2788 }
 0x791   : > { %v1273_v40 = vadd.f32 1.0, %v2789_v35  ;;  %v3859_v35 = vstv %s1333_s24 }
 0x792   : > { %v1454_v45 = vsel %vm872_vm3, %v3857_v34, %v3859_v35  ;;  %vm1465_vm13 = vcmp.lt.s32.totalorder %v3859_v35, %v3742_v39 }
 0x793   : > { %2790 = vrcp.f32 %v1273_v40  ;;  %vm1455_vm7 = vcmp.lt.s32.totalorder %v1454_v45, %v3769_v58 }
 0x79d   : > { %v2791_v59 = vpop.eup %2790 }
 0x7f7   : > { %v1329_v52 = vpop.permute.xlu1 %1328 }
 0x7f8   : > { %v1331_v54 = vsel %vm1303_vm6, %v1329_v52, %v1179_v57  ;;  %v2578_v57 = vadd.f32 %v3704_v7, %v3722_v17 }
 0x7f9   : > { %1432 = vrot.lane.b32.xlu1 %v1331_v54, %s3204_s16 }
 0x802   : > { %v1297_v60 = vpop.permute.xlu0 %1296 }
 0x803   : > { %v3834_v62 = vmul.f32 %v2791_v59, %v1297_v60 }
 0x805   : > { %v1326_v0 = vsel %vm1303_vm6, %v3834_v62, %v1174_v63  ;;  %v2580_v63 = vadd.f32 %v3730_v22, %v3724_v18  ;;  %vm1912_vm6 = vcmp.lt.s32.totalorder %v3754_v47, %v3742_v39 }
 0x806   : > { %2385 = vmatmul.mubr.msk.f32.vlgmr.msra.gmra.mrb[2].mxu0 %vm883_vm2, %v1326_v0  ;;  %v1913_v55 = vsel %vm1912_vm6, 1, %v3203_v26 }
 0x807   : > { %2509 = vmatpush1.bf16.msra.mxu0 %v3611_v33  ;;  %1561 = vmatprep.mubr.f32.mxu0 %v3202_v8 }
 0x808   : > { %2511 = vmatprep.subr.bf16.mxu0 %v3616_v36 }
 0x80b   : > { %2513 = vmatpush1.bf16.msra.mxu0 %v3621_v41 }
 0x80c   : > { %2515 = vmatprep.subr.bf16.mxu0 %v3625_v43 }
 0x80f   : > { %2517 = vmatpush1.bf16.msra.mxu0 %v3631_v48 }
 0x810   : > { %2519 = vmatprep.subr.bf16.mxu0 %v3635_v50 }
 0x813   : > { %2521 = vmatpush1.bf16.msra.mxu0 %v3640_v53 }
 0x814   : > { %2523 = vmatprep.subr.bf16.mxu0 %v3608_v28 }
 0x86b   : > { %v1433_v18 = vpop.permute.xlu1 %1432 }
 0x8d9   : > { %v1411_v3 = vpop.f32.mrb[2].mxu0 }
 0x8da   : > { %v2579_v4 = vadd.f32 %v2578_v57, %v1411_v3  ;;  %v1413_v5 = vpop.f32.mrb[3].mxu0 }
 0x8db   : > { %v2581_v6 = vadd.f32 %v2580_v63, %v1413_v5 }
 0x8dc   : > { %v2386_v23 = vmul.f32 -1.442695, %v2579_v4 }
 0x8dd   : > { %2792 = vtanh.f32 %v2581_v6  ;;  %v2387_v31 = vmul.f32 -1.442695, %v2581_v6 }
 0x8de   : > { %2794 = vpow2.f32 %v2386_v23 }
 0x8e7   : > { %v2793_v21 = vpop.eup %2792 }
 0x8e8   : > { %1437 = vrot.lane.b32.xlu0 %v2793_v21, %s3204_s16  ;;  %v2795_v24 = vpop.eup %2794 }
 0x8e9   : > { %v1424_v25 = vadd.f32 1.0, %v2795_v24 }
 0x8eb   : > { %2796 = vrcp.f32 %v1424_v25 }
 0x8f5   : > { %v2797_v27 = vpop.eup %2796 }
 0x8f6   : > { %v1435_v2 = vmul.f32 %v2797_v27, %v1433_v18 }
 0x95a   : > { %v1438_v17 = vpop.permute.xlu0 %1437 }
 0x95b   : > { %v1440_v19 = vmul.f32 %v2797_v27, %v1438_v17 }
 0x95d   : > { %1442 = vrot.lane.b32.xlu0 %v1440_v19, %s3204_s16 }
 0x9cf   : > { %v1443_v20 = vpop.permute.xlu0 %1442 }
 0x9d0   : > { %v1445_v29 = vadd.f32 %v1443_v20, %v1435_v2 }
 0x9d2   : > { %2798 = vtanh.f32 %v1445_v29  ;;  %1480 = vrot.lane.b32.xlu0 %v1445_v29, %s3204_s16 }
 0x9d3   : > { %2800 = vpow2.f32 %v2387_v31 }
 0x9dc   : > { %v2799_v30 = vpop.eup %2798 }
 0x9dd   : > { %1448 = vrot.lane.b32.xlu1 %v2799_v30, %s3204_s16  ;;  %v2801_v32 = vpop.eup %2800 }
 0x9de   : > { %v1425_v40 = vadd.f32 1.0, %v2801_v32  ;;  %v3890_v32 = vstv %s1484_s26 }
 0x9df   : > { %vm1608_vm5 = vcmp.lt.s32.totalorder %v3890_v32, %v3742_v39 }
 0x9e0   : > { %2802 = vrcp.f32 %v1425_v40  ;;  %v3892_v40 = vstv %s1485_s10 }
 0x9ea   : > { %v2803_v60 = vpop.eup %2802 }
 0xa44   : > { %v1481_v52 = vpop.permute.xlu0 %1480 }
 0xa45   : > { %v1483_v59 = vsel %vm1455_vm7, %v1481_v52, %v1331_v54  ;;  %v2582_v54 = vadd.f32 %v3704_v7, %v3718_v15  ;;  %v1606_v52 = vsel %vm872_vm3, %v3890_v32, %v3892_v40 }
 0xa46   : > { %1584 = vrot.lane.b32.xlu0 %v1483_v59, %s3204_s16  ;;  %vm1607_vm8 = vcmp.lt.s32.totalorder %v1606_v52, %v3769_v58 }
 0xa4f   : > { %v1449_v57 = vpop.permute.xlu1 %1448 }
 0xa50   : > { %v3867_v63 = vmul.f32 %v2803_v60, %v1449_v57 }
 0xa52   : > { %v1478_v3 = vsel %vm1455_vm7, %v3867_v63, %v1326_v0  ;;  %v2584_v0 = vadd.f32 %v3730_v22, %v3720_v16 }
 0xa53   : > { %2390 = vmatmul.mubr.msk.f32.vlgmr.msra.gmra.mrb[4].mxu0 %vm883_vm2, %v1478_v3 }
 0xa54   : > { %2525 = vmatpush1.bf16.msra.mxu0 %v3611_v33  ;;  %1713 = vmatprep.mubr.f32.mxu0 %v3202_v8 }
 0xa55   : > { %2527 = vmatprep.subr.bf16.mxu0 %v3616_v36 }
 0xa58   : > { %2529 = vmatpush1.bf16.msra.mxu0 %v3621_v41 }
 0xa59   : > { %2531 = vmatprep.subr.bf16.mxu0 %v3625_v43 }
 0xa5c   : > { %2533 = vmatpush1.bf16.msra.mxu0 %v3631_v48 }
 0xa5d   : > { %2535 = vmatprep.subr.bf16.mxu0 %v3635_v50 }
 0xa60   : > { %2537 = vmatpush1.bf16.msra.mxu0 %v3640_v53 }
 0xa61   : > { %2539 = vmatprep.subr.bf16.mxu0 %v3608_v28 }
 0xab8   : > { %v1585_v16 = vpop.permute.xlu0 %1584 }
 0xb26   : > { %v1563_v4 = vpop.f32.mrb[4].mxu0 }
 0xb27   : > { %v2583_v5 = vadd.f32 %v2582_v54, %v1563_v4  ;;  %v1565_v6 = vpop.f32.mrb[5].mxu0 }
 0xb28   : > { %v2585_v21 = vadd.f32 %v2584_v0, %v1565_v6 }
 0xb29   : > { %v2391_v24 = vmul.f32 -1.442695, %v2583_v5 }
 0xb2a   : > { %2804 = vtanh.f32 %v2585_v21  ;;  %v2392_v30 = vmul.f32 -1.442695, %v2585_v21 }
 0xb2b   : > { %2806 = vpow2.f32 %v2391_v24 }
 0xb34   : > { %v2805_v23 = vpop.eup %2804 }
 0xb35   : > { %1589 = vrot.lane.b32.xlu1 %v2805_v23, %s3204_s16  ;;  %v2807_v25 = vpop.eup %2806 }
 0xb36   : > { %v1576_v27 = vadd.f32 1.0, %v2807_v25 }
 0xb38   : > { %2808 = vrcp.f32 %v1576_v27 }
 0xb42   : > { %v2809_v17 = vpop.eup %2808 }
 0xb43   : > { %v1587_v18 = vmul.f32 %v2809_v17, %v1585_v16 }
 0xba7   : > { %v1590_v15 = vpop.permute.xlu1 %1589 }
 0xba8   : > { %v1592_v19 = vmul.f32 %v2809_v17, %v1590_v15 }
 0xbaa   : > { %1594 = vrot.lane.b32.xlu1 %v1592_v19, %s3204_s16 }
 0xc1c   : > { %v1595_v2 = vpop.permute.xlu1 %1594 }
 0xc1d   : > { %v1597_v20 = vadd.f32 %v1595_v2, %v1587_v18 }
 0xc1f   : > { %2810 = vtanh.f32 %v1597_v20  ;;  %1632 = vrot.lane.b32.xlu1 %v1597_v20, %s3204_s16 }
 0xc20   : > { %2812 = vpow2.f32 %v2392_v30 }
 0xc29   : > { %v2811_v29 = vpop.eup %2810 }
 0xc2a   : > { %1600 = vrot.lane.b32.xlu0 %v2811_v29, %s3204_s16  ;;  %v2813_v31 = vpop.eup %2812 }
 0xc2b   : > { %v1577_v45 = vadd.f32 1.0, %v2813_v31  ;;  %v3923_v31 = vstv %s1636_s27 }
 0xc2d   : > { %2814 = vrcp.f32 %v1577_v45  ;;  %v3925_v45 = vstv %s1637_s7 }
 0xc2e   : > { %vm1769_vm14 = vcmp.lt.s32.totalorder %v3925_v45, %v3742_v39 }
 0xc2f   : > { %v1770_v35 = vsel %vm1769_vm14, 1, %v3203_v26  ;;  %vm1152_vm14 = vcmp.lt.s32.totalorder %v3791_v42, %v3742_v39 }
 0xc37   : > { %v2815_v54 = vpop.eup %2814 }
 0xc91   : > { %v1633_v60 = vpop.permute.xlu1 %1632 }
 0xc92   : > { %v1635_v57 = vsel %vm1607_vm8, %v1633_v60, %v1483_v59  ;;  %v2586_v59 = vadd.f32 %v3704_v7, %v3714_v13  ;;  %v1758_v60 = vsel %vm872_vm3, %v3923_v31, %v3925_v45 }
 0xc93   : > { %1736 = vrot.lane.b32.xlu1 %v1635_v57, %s3204_s16  ;;  %vm1759_vm9 = vcmp.lt.s32.totalorder %v1758_v60, %v3769_v58  ;;  %v1305_v60 = vsel %vm1304_vm4, 1, %v3203_v26 }
 0xc9c   : > { %v1601_v0 = vpop.permute.xlu0 %1600 }
 0xc9d   : > { %v3900_v4 = vmul.f32 %v2815_v54, %v1601_v0 }
 0xc9f   : > { %v1630_v5 = vsel %vm1607_vm8, %v3900_v4, %v1478_v3  ;;  %v2588_v3 = vadd.f32 %v3730_v22, %v3716_v14 }
 0xca0   : > { %2395 = vmatmul.mubr.msk.f32.vlgmr.msra.gmra.mrb[6].mxu0 %vm883_vm2, %v1630_v5 }
 0xca1   : > { %2541 = vmatpush1.bf16.msra.mxu0 %v3611_v33  ;;  %1865 = vmatprep.mubr.f32.mxu0 %v3202_v8 }
 0xca2   : > { %2543 = vmatprep.subr.bf16.mxu0 %v3616_v36 }
 0xca5   : > { %2545 = vmatpush1.bf16.msra.mxu0 %v3621_v41 }
 0xca6   : > { %2547 = vmatprep.subr.bf16.mxu0 %v3625_v43 }
 0xca9   : > { %2549 = vmatpush1.bf16.msra.mxu0 %v3631_v48 }
 0xcaa   : > { %2551 = vmatprep.subr.bf16.mxu0 %v3635_v50 }
 0xcad   : > { %2553 = vmatpush1.bf16.msra.mxu0 %v3640_v53 }
 0xcae   : > { %2555 = vmatprep.subr.bf16.mxu0 %v3608_v28 }
 0xd05   : > { %v1737_v14 = vpop.permute.xlu1 %1736 }
 0xd73   : > { %v1715_v6 = vpop.f32.mrb[6].mxu0 }
 0xd74   : > { %v2587_v21 = vadd.f32 %v2586_v59, %v1715_v6  ;;  %v1717_v23 = vpop.f32.mrb[7].mxu0 }
 0xd75   : > { %v2589_v24 = vadd.f32 %v2588_v3, %v1717_v23 }
 0xd76   : > { %v2396_v27 = vmul.f32 -1.442695, %v2587_v21 }
 0xd77   : > { %2816 = vtanh.f32 %v2589_v24  ;;  %v2397_v29 = vmul.f32 -1.442695, %v2589_v24 }
 0xd78   : > { %2818 = vpow2.f32 %v2396_v27 }
 0xd81   : > { %v2817_v25 = vpop.eup %2816 }
 0xd82   : > { %1741 = vrot.lane.b32.xlu0 %v2817_v25, %s3204_s16  ;;  %v2819_v17 = vpop.eup %2818 }
 0xd83   : > { %v1728_v15 = vadd.f32 1.0, %v2819_v17 }
 0xd85   : > { %2820 = vrcp.f32 %v1728_v15 }
 0xd8f   : > { %v2821_v28 = vpop.eup %2820 }
 0xd90   : > { %v1739_v16 = vmul.f32 %v2821_v28, %v1737_v14 }
 0xdf4   : > { %v1742_v13 = vpop.permute.xlu0 %1741 }
 0xdf5   : > { %v1744_v19 = vmul.f32 %v2821_v28, %v1742_v13 }
 0xdf7   : > { %1746 = vrot.lane.b32.xlu0 %v1744_v19, %s3204_s16 }
 0xe69   : > { %v1747_v18 = vpop.permute.xlu0 %1746 }
 0xe6a   : > { %v1749_v2 = vadd.f32 %v1747_v18, %v1739_v16  ;;  %v1010_v18 = vsel %vm1009_vm11, 1, %v3203_v26  ;;  %vm1161_vm11 = vcmp.lt.s32.totalorder %v3793_v44, %v3742_v39 }
 0xe6c   : > { %2822 = vtanh.f32 %v1749_v2  ;;  %1784 = vrot.lane.b32.xlu0 %v1749_v2, %s3204_s16  ;;  %v1314_v2 = vsel %vm1313_vm12, 1, %v3203_v26  ;;  %vm1617_vm12 = vcmp.lt.s32.totalorder %v3892_v40, %v3742_v39 }
 0xe6d   : > { %2824 = vpow2.f32 %v2397_v29  ;;  %v1466_v29 = vsel %vm1465_vm13, 1, %v3203_v26  ;;  %vm1921_vm13 = vcmp.lt.s32.totalorder %v3756_v49, %v3742_v39 }
 0xe76   : > { %v2823_v20 = vpop.eup %2822 }
 0xe77   : > { %1752 = vrot.lane.b32.xlu1 %v2823_v20, %s3204_s16  ;;  %v2825_v30 = vpop.eup %2824 }
 0xe78   : > { %v1729_v52 = vadd.f32 1.0, %v2825_v30 }
 0xe7a   : > { %2826 = vrcp.f32 %v1729_v52  ;;  %v3985_v52 = vstv %s1941_s23 }
 0xe7b   : > { %vm2072_vm15 = vcmp.lt.s32.totalorder %v3985_v52, %v3742_v39 }
 0xe7c   : > { %v2073_v45 = vsel %vm2072_vm15, 1, %v3203_v26  ;;  %vm1456_vm15 = vcmp.lt.s32.totalorder %v3857_v34, %v3742_v39 }
 0xe84   : > { %v2827_v59 = vpop.eup %2826 }
 0xede   : > { %v1785_v54 = vpop.permute.xlu0 %1784 }
 0xedf   : > { %v1787_v0 = vsel %vm1759_vm9, %v1785_v54, %v1635_v57  ;;  %v2590_v57 = vadd.f32 %v3704_v7, %v3710_v11  ;;  %v1609_v54 = vsel %vm1608_vm5, 1, %v3203_v26  ;;  %vm1760_vm5 = vcmp.lt.s32.totalorder %v3923_v31, %v3742_v39 }
 0xee0   : > { %1888 = vrot.lane.b32.xlu0 %v1787_v0, %s3204_s16  ;;  %v1761_v34 = vsel %vm1760_vm5, 1, %v3203_v26 }
 0xee9   : > { %v1753_v3 = vpop.permute.xlu1 %1752 }
 0xeea   : > { %v3933_v6 = vmul.f32 %v2827_v59, %v1753_v3 }
 0xeec   : > { %v1782_v21 = vsel %vm1759_vm9, %v3933_v6, %v1630_v5 }
 0xeed   : > { %2400 = vmatmul.mubr.msk.f32.vlgmr.msra.gmra.mrb[8].mxu0 %vm883_vm2, %v1782_v21 }
 0xeee   : > { %2557 = vmatpush1.bf16.msra.mxu0 %v3611_v33  ;;  %2016 = vmatprep.mubr.f32.mxu0 %v3202_v8  ;;  %v2592_v33 = vadd.f32 %v3730_v22, %v3712_v12 }
 0xeef   : > { %2559 = vmatprep.subr.bf16.mxu0 %v3616_v36 }
 0xef2   : > { %2561 = vmatpush1.bf16.msra.mxu0 %v3621_v41 }
 0xef3   : > { %2563 = vmatprep.subr.bf16.mxu0 %v3625_v43 }
 0xef6   : > { %2565 = vmatpush1.bf16.msra.mxu0 %v3631_v48 }
 0xef7   : > { %2567 = vmatprep.subr.bf16.mxu0 %v3635_v50 }
 0xefa   : > { %2569 = vmatpush1.bf16.msra.mxu0 %v3640_v53 }
 0xf52   : > { %v1889_v11 = vpop.permute.xlu0 %1888 }
 0xfc0   : > { %v1867_v5 = vpop.f32.mrb[8].mxu0 }
 0xfc1   : > { %v2591_v8 = vadd.f32 %v2590_v57, %v1867_v5  ;;  %v1869_v23 = vpop.f32.mrb[9].mxu0 }
 0xfc2   : > { %v2593_v36 = vadd.f32 %v2592_v33, %v1869_v23 }
 0xfc3   : > { %v2401_v43 = vmul.f32 -1.442695, %v2591_v8 }
 0xfc4   : > { %2828 = vtanh.f32 %v2593_v36  ;;  %v2402_v28 = vmul.f32 -1.442695, %v2593_v36 }
 0xfc5   : > { %2830 = vpow2.f32 %v2401_v43  ;;  %v2594_v43 = vadd.f32 %v3704_v7, %v3706_v9 }
 0xfce   : > { %v2829_v41 = vpop.eup %2828 }
 0xfcf   : > { %1893 = vrot.lane.b32.xlu1 %v2829_v41, %s3204_s16  ;;  %v2831_v48 = vpop.eup %2830 }
 0xfd0   : > { %v1880_v50 = vadd.f32 1.0, %v2831_v48  ;;  %v2596_v48 = vadd.f32 %v3730_v22, %v3708_v10  ;;  %v1162_v10 = vsel %vm1161_vm11, 1, %v3203_v26  ;;  %v1618_v22 = vsel %vm1617_vm12, 1, %v3203_v26 }
 0xfd2   : > { %2832 = vrcp.f32 %v1880_v50 }
 0xfdc   : > { %v2833_v53 = vpop.eup %2832 }
 0xfdd   : > { %v1891_v12 = vmul.f32 %v2833_v53, %v1889_v11 }
0x1041   : > { %v1894_v24 = vpop.permute.xlu1 %1893 }
0x1042   : > { %v1896_v25 = vmul.f32 %v2833_v53, %v1894_v24 }
0x1044   : > { %1898 = vrot.lane.b32.xlu1 %v1896_v25, %s3204_s16 }
0x10b6   : > { %v1899_v27 = vpop.permute.xlu1 %1898 }
0x10b7   : > { %v1901_v17 = vadd.f32 %v1899_v27, %v1891_v12 }
0x10b9   : > { %2834 = vtanh.f32 %v1901_v17  ;;  %1936 = vrot.lane.b32.xlu1 %v1901_v17, %s3204_s16 }
0x10ba   : > { %2836 = vpow2.f32 %v2402_v28  ;;  %v1922_v28 = vsel %vm1921_vm13, 1, %v3203_v26 }
0x10c3   : > { %v2835_v15 = vpop.eup %2834 }
0x10c4   : > { %1904 = vrot.lane.b32.xlu0 %v2835_v15, %s3204_s16  ;;  %v2837_v13 = vpop.eup %2836 }
0x10c5   : > { %v1881_v19 = vadd.f32 1.0, %v2837_v13 }
0x10c7   : > { %2838 = vrcp.f32 %v1881_v19 }
0x10d1   : > { %v2839_v56 = vpop.eup %2838 }
0x112b   : > { %v1937_v14 = vpop.permute.xlu1 %1936 }
0x112c   : > { %v3960_v16 = vsel %vm1911_vm10, %v1937_v14, %v1787_v0  ;;  %v1153_v14 = vsel %vm1152_vm14, 1, %v3203_v26 }
0x112d   : > { %2039 = vrot.lane.b32.xlu1 %v3960_v16, %s3204_s16 }
0x1131   : > { %1012 = vperm.xlu1 %2754, %v1010_v18  }
0x1135   : > { %1316 = vperm.xlu1 %2754, %v1314_v2   ;;  %v1457_v2 = vsel %vm1456_vm15, 1, %v3203_v26 }
0x1136   : > { %v1905_v20 = vpop.permute.xlu0 %1904 }
0x1137   : > { %v3971_v30 = vmul.f32 %v2839_v56, %v1905_v20 }
0x1139   : > { %v3980_v38 = vsel %vm1911_vm10, %v3971_v30, %v1782_v21  ;;  %1468 = vperm.xlu1 %2754, %v1466_v29  }
0x113a   : > { %2405 = vmatmul.mubr.msk.f32.vlgmr.msra.gmra.mrb[10].mxu0 %vm883_vm2, %v3980_v38 }
0x113d   : > { %1772 = vperm.xlu1 %2754, %v1770_v35  }
0x1141   : > { %2075 = vperm.xlu1 %2754, %v2073_v45  }
0x1145   : > { %1004 = vperm.xlu1 %2754, %v1002_v51  }
0x1149   : > { %1307 = vperm.xlu1 %2754, %v1305_v60  }
0x114d   : > { %1611 = vperm.xlu1 %2754, %v1609_v54  }
0x1151   : > { %1915 = vperm.xlu1 %2754, %v1913_v55  }
0x119f   : > { %v2040_v0 = vpop.permute.xlu1 %2039 }
0x11b0   : > { %v4003_v37 = vpop.permute.xlu1 %1012 }
0x11b4   : > { %v4005_v59 = vpop.permute.xlu1 %1316 }
0x11b8   : > { %v4007_v3 = vpop.permute.xlu1 %1468 }
0x11b9   : > { %vm1470_vm4 = vcmp.eq.s32.totalorder %v4007_v3, 1 }
0x11ba   : > { %v1471_v42 = vsel %vm1470_vm4, %v3867_v63, 0.0 }
0x11bc   : > { %v4009_v32 = vpop.permute.xlu1 %1772 }
0x11bd   : > { %vm1774_vm6 = vcmp.eq.s32.totalorder %v4009_v32, 1 }
0x11be   : > { %v1775_v20 = vsel %vm1774_vm6, %v3933_v6, 0.0 }
0x11c0   : > { %v4011_v21 = vpop.permute.xlu1 %2075 }
0x11c1   : > { %vm2077_vm13 = vcmp.eq.s32.totalorder %v4011_v21, 1 }
0x11c4   : > { %v1005_v57 = vpop.permute.xlu1 %1004 }
0x11c5   : > { %vm1006_vm7 = vcmp.eq.s32.totalorder %v1005_v57, 1 }
0x11c6   : > { %v1007_v47 = vsel %vm1006_vm7, %v3778_v1, 0.0 }
0x11c7   : > { %1008 = vst.msk [vmem:[%s3599_s22] sm:$0xff] %vm526_vm1, %v1007_v47 }
0x11c8   : > { %v1308_v33 = vpop.permute.xlu1 %1307 }
0x11c9   : > { %vm1309_vm8 = vcmp.eq.s32.totalorder %v1308_v33, 1 }
0x11ca   : > { %v1310_v5 = vsel %vm1309_vm8, %v3834_v62, 0.0  ;;  %vm1014_vm8 = vcmp.eq.s32.totalorder %v4003_v37, 1 }
0x11cb   : > { %2383 = vst.msk [vmem:[%s3599_s22 + $0x10] sm:$0xff] %vm526_vm1, %v1310_v5  ;;  %v1015_v31 = vsel %vm1014_vm8, %v3778_v1, 0.0 }
0x11cc   : > { %v1612_v8 = vpop.permute.xlu1 %1611 }
0x11cd   : > { %vm1613_vm9 = vcmp.eq.s32.totalorder %v1612_v8, 1 }
0x11ce   : > { %v1614_v23 = vsel %vm1613_vm9, %v3900_v4, 0.0  ;;  %vm1318_vm9 = vcmp.eq.s32.totalorder %v4005_v59, 1 }
0x11cf   : > { %2393 = vst.msk [vmem:[%s3599_s22 + $0x20] sm:$0xff] %vm526_vm1, %v1614_v23  ;;  %v1319_v45 = vsel %vm1318_vm9, %v3834_v62, 0.0 }
0x11d0   : > { %v1916_v36 = vpop.permute.xlu1 %1915 }
0x11d1   : > { %vm1917_vm10 = vcmp.eq.s32.totalorder %v1916_v36, 1 }
0x11d2   : > { %v1918_v41 = vsel %vm1917_vm10, %v3971_v30, 0.0 }
0x11d3   : > { %2403 = vst.msk [vmem:[%s3599_s22 + $0x30] sm:$0xff] %vm526_vm1, %v1918_v41 }
0x120d   : > { %v2018_v50 = vpop.f32.mrb[10].mxu0 }
0x120e   : > { %v2595_v53 = vadd.f32 %v2594_v43, %v2018_v50  ;;  %v2020_v24 = vpop.f32.mrb[11].mxu0 }
0x120f   : > { %v4029_v25 = vadd.f32 %v2596_v48, %v2020_v24 }
0x1210   : > { %v2406_v12 = vmul.f32 -1.442695, %v2595_v53 }
0x1211   : > { %2840 = vtanh.f32 %v4029_v25  ;;  %v2407_v1 = vmul.f32 -1.442695, %v4029_v25 }
0x1212   : > { %2842 = vpow2.f32 %v2406_v12 }
0x121b   : > { %v2841_v11 = vpop.eup %2840 }
0x121c   : > { %2044 = vrot.lane.b32.xlu0 %v2841_v11, %s3204_s16  ;;  %v2843_v27 = vpop.eup %2842 }
0x121d   : > { %v2031_v17 = vadd.f32 1.0, %v2843_v27 }
0x121f   : > { %2844 = vrcp.f32 %v2031_v17 }
0x1229   : > { %v2845_v15 = vpop.eup %2844 }
0x122a   : > { %v2042_v13 = vmul.f32 %v2845_v15, %v2040_v0 }
0x128e   : > { %v2045_v7 = vpop.permute.xlu0 %2044 }
0x128f   : > { %v2047_v9 = vmul.f32 %v2845_v15, %v2045_v7 }
0x1291   : > { %2049 = vrot.lane.b32.xlu0 %v2047_v9, %s3204_s16 }
0x1295   : > { %1164 = vperm.xlu0 %2755, %v1162_v10  }
0x1299   : > { %1620 = vperm.xlu0 %2755, %v1618_v22  }
0x129d   : > { %1924 = vperm.xlu0 %2755, %v1922_v28  }
0x1303   : > { %v2050_v19 = vpop.permute.xlu0 %2049 }
0x1304   : > { %v2052_v44 = vadd.f32 %v2050_v19, %v2042_v13 }
0x1306   : > { %2846 = vtanh.f32 %v2052_v44  ;;  %2086 = vrot.lane.b32.xlu1 %v2052_v44, %s3204_s16 }
0x1307   : > { %2848 = vpow2.f32 %v2407_v1 }
0x1310   : > { %v2847_v40 = vpop.eup %2846 }
0x1311   : > { %2055 = vrot.lane.b32.xlu0 %v2847_v40, %s3204_s16  ;;  %s1940_s16 = sadd.s32 7, %s3749_s9  ;;  %v2849_v60 = vpop.eup %2848 }
0x1312   : > { %v2059_v56 = vstv %s1940_s16  ;;  %v2032_v54 = vadd.f32 1.0, %v2849_v60 }
0x1313   : > { %vm2063_vm7 = vcmp.lt.s32.totalorder %v2059_v56, %v3742_v39  ;;  %v2061_v62 = vsel %vm872_vm3, %v2059_v56, %v3985_v52 }
0x1314   : > { %v1165_v49 = vpop.permute.xlu0 %1164  ;;  %v2064_v29 = vsel %vm2063_vm7, 1, %v3203_v26  ;;  %vm2062_vm12 = vcmp.lt.s32.totalorder %v2061_v62, %v3769_v58  ;;  %2850 = vrcp.f32 %v2032_v54 }
0x1315   : > { %vm1166_vm0 = vcmp.eq.s32.totalorder %v1165_v49, 1  ;;  %1155 = vperm.xlu0 %2755, %v1153_v14  }
0x1316   : > { %v1167_v18 = vsel %vm1166_vm0, %v3801_v61, 0.0 }
0x1317   : > { %1169 = vrot.lane.b32.xlu1 %v1167_v18, %s3205_s29 }
0x1318   : > { %v1621_v35 = vpop.permute.xlu0 %1620 }
0x1319   : > { %1459 = vperm.xlu0 %2755, %v1457_v2   ;;  %vm1622_vm10 = vcmp.eq.s32.totalorder %v1621_v35, 1 }
0x131a   : > { %v1623_v26 = vsel %vm1622_vm10, %v3900_v4, 0.0 }
0x131b   : > { %1473 = vrot.lane.b32.xlu1 %v1471_v42, %s3205_s29 }
0x131c   : > { %v1925_v39 = vpop.permute.xlu0 %1924 }
0x131d   : > { %1763 = vperm.xlu0 %2755, %v1761_v34   ;;  %vm1926_vm11 = vcmp.eq.s32.totalorder %v1925_v39, 1 }
0x131e   : > { %v1927_v51 = vsel %vm1926_vm11, %v3971_v30, 0.0  ;;  %v2851_v55 = vpop.eup %2850 }
0x131f   : > { %1777 = vrot.lane.b32.xlu1 %v1775_v20, %s3205_s29 }
0x1321   : > { %2066 = vperm.xlu0 %2755, %v2064_v29  }
0x1325   : > { %1017 = vrot.lane.b32.xlu0 %v1015_v31, %s3205_s29 }
0x1329   : > { %1321 = vrot.lane.b32.xlu0 %v1319_v45, %s3205_s29 }
0x132d   : > { %1625 = vrot.lane.b32.xlu0 %v1623_v26, %s3205_s29 }
0x1331   : > { %1929 = vrot.lane.b32.xlu0 %v1927_v51, %s3205_s29 }
0x1378   : > { %v2087_v4 = vpop.permute.xlu1 %2086 }
0x1379   : > { %v2089_v30 = vsel %vm2062_vm12, %v2087_v4, %v3960_v16 }
0x137a   : > { %2091 = vst.msk [vmem:[#allocation5] sm:$0xff] %vm883_vm2, %v2089_v30  ;;  %2097 = vst.msk [vmem:[#allocation19] sm:$0xff] (!%p2409_p3), %vm883_vm2, %v2089_v30 }
0x1383   : > { %v2056_v0 = vpop.permute.xlu0 %2055 }
0x1384   : > { %v2058_v37 = vmul.f32 %v2851_v55, %v2056_v0 }
0x1386   : > { %v2084_v46 = vsel %vm2062_vm12, %v2058_v37, %v3980_v38  ;;  %v2078_v59 = vsel %vm2077_vm13, %v2058_v37, 0.0 }
0x1387   : > { %2090 = vst.msk [vmem:[#allocation4] sm:$0xff] %vm883_vm2, %v2084_v46  ;;  %2080 = vrot.lane.b32.xlu1 %v2078_v59, %s3205_s29  ;;  %2096 = vst.msk [vmem:[#allocation18] sm:$0xff] (!%p2409_p3), %vm883_vm2, %v2084_v46 }
0x1389   : > { %v1170_v58 = vpop.permute.xlu1 %1169 }
0x138a   : > { %2379 = vst.msk [vmem:[%s3601_s11 + $0x30] sm:$0xff] %vm526_vm1, %v1170_v58 }
0x138d   : > { %v1474_v16 = vpop.permute.xlu1 %1473 }
0x138e   : > { %2389 = vst.msk [vmem:[%s3601_s11 + $0x20] sm:$0xff] %vm526_vm1, %v1474_v16 }
0x1391   : > { %v1778_v52 = vpop.permute.xlu1 %1777 }
0x1392   : > { %2399 = vst.msk [vmem:[%s3601_s11 + $0x10] sm:$0xff] %vm526_vm1, %v1778_v52 }
0x1394   : > { %v1156_v3 = vpop.permute.xlu0 %1155 }
0x1395   : > { %vm1157_vm3 = vcmp.eq.s32.totalorder %v1156_v3, 1 }
0x1396   : > { %v1158_v38 = vsel %vm1157_vm3, %v3801_v61, 0.0 }
0x1397   : > { %2378 = vst.msk [vmem:[%s3599_s22 + $0x8] sm:$0xff] %vm526_vm1, %v1158_v38 }
0x1398   : > { %v1460_v32 = vpop.permute.xlu0 %1459 }
0x1399   : > { %vm1461_vm14 = vcmp.eq.s32.totalorder %v1460_v32, 1 }
0x139a   : > { %v1462_v21 = vsel %vm1461_vm14, %v3867_v63, 0.0 }
0x139b   : > { %2388 = vst.msk [vmem:[%s3599_s22 + $0x18] sm:$0xff] %vm526_vm1, %v1462_v21 }
0x139c   : > { %v1764_v57 = vpop.permute.xlu0 %1763 }
0x139d   : > { %vm1765_vm15 = vcmp.eq.s32.totalorder %v1764_v57, 1 }
0x139e   : > { %v1766_v47 = vsel %vm1765_vm15, %v3933_v6, 0.0 }
0x139f   : > { %2398 = vst.msk [vmem:[%s3599_s22 + $0x28] sm:$0xff] %vm526_vm1, %v1766_v47 }
0x13a0   : > { %v2067_v33 = vpop.permute.xlu0 %2066 }
0x13a1   : > { %vm2068_vm0 = vcmp.eq.s32.totalorder %v2067_v33, 1 }
0x13a2   : > { %v2069_v61 = vsel %vm2068_vm0, %v2058_v37, 0.0 }
0x13a3   : > { %2408 = vst.msk [vmem:[%s3599_s22 + $0x38] sm:$0xff] %vm526_vm1, %v2069_v61 }
0x13a4   : > { %v1018_v5 = vpop.permute.xlu0 %1017 }
0x13a5   : > { %2374 = vst.msk [vmem:[%s3601_s11 + $0x38] sm:$0xff] %vm526_vm1, %v1018_v5 }
0x13a8   : > { %v1322_v8 = vpop.permute.xlu0 %1321 }
0x13a9   : > { %2384 = vst.msk [vmem:[%s3601_s11 + $0x28] sm:$0xff] %vm526_vm1, %v1322_v8 }
0x13ac   : > { %v1626_v63 = vpop.permute.xlu0 %1625 }
0x13ad   : > { %2394 = vst.msk [vmem:[%s3601_s11 + $0x18] sm:$0xff] %vm526_vm1, %v1626_v63 }
0x13b0   : > { %v1930_v23 = vpop.permute.xlu0 %1929 }
0x13b1   : > { %2404 = vst.msk [vmem:[%s3601_s11 + $0x8] sm:$0xff] %vm526_vm1, %v1930_v23 }
0x13f4   : > { %2095 = sbr.rel (%p2409_p3) target bundleno = 5115 (0x13fb), region = 76 }
0x13f9   : > { %v2081_v6 = vpop.permute.xlu1 %2080 }
0x13fa   : > { %2083 = vst.msk [vmem:[%s3601_s11] sm:$0xff] %vm526_vm1, %v2081_v6 }
0x13fb PF: > { %s2127_s9 = ssub.s32 1, %s3301_s20  ;;  %s2134_s0 = sshll.u32 %s3601_s11, 4  ;;  %s4123_s0 = int_to_ptr.vmem [resolvable:$true] %s2134_s0 }
0x13fc   : > { %s2425_s12 = sshll.u32 %s2127_s9, 10  ;;  %s4332_s10 = sld [smem:[#allocation36_spill]] }
0x13fd   : > { %s4127_s7 = scalar_lea.sflag [#allocation17], %s409_s1  ;;  %s2996_s23 = scalar_lea.vmem %s4123_s0, 1024 }
0x13fe   : > { %p2997_p13 = scmp.ne.s32.totalorder %s4123_s0, %s2996_s23  ;;  %p4333_p6 = scmp.ne.s32.totalorder %s4318_s30, 0 }
0x13ff   : > { %s3206_s29 = smov [#allocation16]  }
0x1400   : > { %p2998_p0 = pnand %p2997_p13, %p4333_p6  ;;  %s3000_s11 = sshll.u32 %s3206_s29, 4  ;;  %s3001_s11 = int_to_ptr.vmem [resolvable:$false] %s3000_s11 }
0x1401   : > { %s3002_s16 = scalar_lea.vmem %s3001_s11, 2048  ;;  %p3003_p5 = scmp.lt.s32.totalorder %s4123_s0, %s3001_s11 }
0x1402   : > { %s4121_s27 = scalar_lea.hbm %s4332_s10, %s2425_s12  ;;  %p2999_p4 = pneg %p2998_p0 }
0x1403   : > { %p3004_p11 = scmp.lt.s32.totalorder %s3002_s16, %s2996_s23 }
0x1405   : > { %p3005_p8 = por %p3004_p11, %p3003_p5 }
0x1407   : > { %p3006_p12 = pnand %p3005_p8, %p2999_p4 }
0x1409   : > { %3009 = shalt.err (!%p3006_p12)
}
0x140a   : > { %s3010_s1 = scalar_lea.hbm %s4121_s27, 1024  ;;  %s3014_s24 = scalar_lea.hbm %s4332_s10, 2048 }
0x140b   : > { %p3011_p7 = scmp.ne.s32.totalorder %s4121_s27, %s3010_s1  ;;  %p3015_p2 = scmp.lt.u32.totalorder %s4121_s27, %s4332_s10 }
0x140c   : > { %p3016_p1 = scmp.lt.u32.totalorder %s3014_s24, %s3010_s1  ;;  %p3018_p13 = scmp.lt.u32.totalorder %s3010_s1, %s4121_s27 }
0x140d   : > { %p3012_p9 = pnand %p3011_p7, %p4333_p6 }
0x140e   : > { %p3017_p3 = por %p3016_p1, %p3015_p2 }
0x140f   : > { %p3013_p10 = pneg %p3012_p9 }
0x1410   : > { %p3019_p0 = por %p3018_p13, %p3017_p3 }
0x1412   : > { %p3020_p4 = pnand %p3019_p0, %p3013_p10 }
0x1414   : > { %3023 = shalt.err (!%p3020_p4)
}
0x1415   : > { %s3207_s23 = smov 128   ;;  %s3208_s11 = smov 8  }
0x1416   : > { %2635 = dma.vmem_to_hbm [thread:$0]  (%p4333_p6), %s4123_s0, 1024, %s4121_s27, %s4127_s7, %s3207_s23, %s3207_s23, %s3208_s11  }
0x1417   : > { %s2424_s16 = sshll.u32 %s3301_s20, 10  ;;  %s4334_s12 = sld [smem:[#allocation35_spill]] }
0x1418   : > { %s2117_s26 = sshll.u32 %s3599_s22, 4  ;;  %s2099_s29 = scalar_lea.sflag [#allocation8], %s3571_s13  ;;  %s4161_s26 = int_to_ptr.vmem [resolvable:$true] %s2117_s26 }
0x1419   : > { %s3024_s2 = scalar_lea.vmem %s4161_s26, 1024  ;;  %p4335_p11 = scmp.ne.s32.totalorder %s4313_s8, 0 }
0x141a   : > { %p3025_p5 = scmp.ne.s32.totalorder %s4161_s26, %s3024_s2  ;;  %s3209_s30 = smov [#allocation15]  }
0x141b   : > { %s3028_s0 = sshll.u32 %s3209_s30, 4  ;;  %s3029_s0 = int_to_ptr.vmem [resolvable:$false] %s3028_s0 }
0x141c   : > { %p3026_p8 = pnand %p3025_p5, %p4335_p11  ;;  %s3030_s27 = scalar_lea.vmem %s3029_s0, 2048 }
0x141d   : > { %s4158_s24 = scalar_lea.hbm %s4334_s12, %s2424_s16  ;;  %p3031_p6 = scmp.lt.s32.totalorder %s4161_s26, %s3029_s0 }
0x141e   : > { %p3027_p12 = pneg %p3026_p8  ;;  %p3032_p7 = scmp.lt.s32.totalorder %s3030_s27, %s3024_s2 }
0x1420   : > { %p3033_p9 = por %p3032_p7, %p3031_p6 }
0x1422   : > { %p3034_p10 = pnand %p3033_p9, %p3027_p12 }
0x1424   : > { %3037 = shalt.err (!%p3034_p10)
}
0x1425   : > { %s3038_s22 = scalar_lea.hbm %s4158_s24, 1024  ;;  %s3042_s1 = scalar_lea.hbm %s4334_s12, 2048 }
0x1426   : > { %p3039_p2 = scmp.ne.s32.totalorder %s4158_s24, %s3038_s22  ;;  %p3043_p13 = scmp.lt.u32.totalorder %s4158_s24, %s4334_s12 }
0x1427   : > { %p3044_p0 = scmp.lt.u32.totalorder %s3042_s1, %s3038_s22  ;;  %p3046_p5 = scmp.lt.u32.totalorder %s3038_s22, %s4158_s24 }
0x1428   : > { %p3040_p1 = pnand %p3039_p2, %p4335_p11 }
0x1429   : > { %p3045_p4 = por %p3044_p0, %p3043_p13 }
0x142a   : > { %p3041_p3 = pneg %p3040_p1 }
0x142b   : > { %p3047_p8 = por %p3046_p5, %p3045_p4 }
0x142d   : > { %p3048_p12 = pnand %p3047_p8, %p3041_p3 }
0x142f   : > { %3051 = shalt.err (!%p3048_p12)
}
0x1430   : > { %2634 = dma.vmem_to_hbm [thread:$0]  (%p4335_p11), %s4161_s26, 1024, %s4158_s24, %s2099_s29, %s3207_s23, %s3207_s23, %s3208_s11  }
0x1431   : > { %s3210_s2 = smov [#allocation18]   ;;  %s3211_s27 = smov [#allocation19]  }
0x1432   : > { %s2148_s0 = sshll.u32 %s3210_s2, 4  ;;  %s2159_s7 = sshll.u32 %s3211_s27, 4  ;;  %s2149_s0 = int_to_ptr.vmem [resolvable:$true] %s2148_s0  ;;  %s2160_s7 = int_to_ptr.vmem [resolvable:$true] %s2159_s7 }
0x1433   : > { %s3052_s22 = scalar_lea.vmem %s2149_s0, 128  ;;  %p4336_p7 = scmp.eq.s32.totalorder %s3301_s20, 1 }
0x1434   : > { %p3053_p6 = scmp.ne.s32.totalorder %s2149_s0, %s3052_s22  ;;  %p3059_p2 = scmp.lt.s32.totalorder %s2149_s0, %s2149_s0 }
0x1435   : > { %p3060_p1 = scmp.lt.s32.totalorder %s3052_s22, %s3052_s22 }
0x1436   : > { %p3054_p9 = pnand %p3053_p6, %p4336_p7 }
0x1437   : > { %p3061_p3 = por %p3060_p1, %p3059_p2 }
0x1438   : > { %p3055_p10 = pneg %p3054_p9 }
0x143a   : > { %p3062_p13 = pnand %p3061_p3, %p3055_p10 }
0x143c   : > { %3065 = shalt.err (!%p3062_p13)
}
0x143d   : > { %s4337_s16 = sld [smem:[#allocation37_spill]]  ;;  %p4339_p0 = pmov %p4336_p7 }
0x1443   : > { %s4338_s1 = smov %s4337_s16  ;;  %s3066_s23 = scalar_lea.hbm %s4337_s16, 128 }
0x1444   : > { %p3067_p11 = scmp.ne.s32.totalorder %s4338_s1, %s3066_s23  ;;  %p3072_p8 = scmp.lt.u32.totalorder %s3066_s23, %s4338_s1 }
0x1446   : > { %p3068_p4 = pnand %p3067_p11, %p4339_p0 }
0x1448   : > { %p3069_p5 = pneg %p3068_p4 }
0x144a   : > { %p3074_p12 = pnand %p3072_p8, %p3069_p5 }
0x144c   : > { %3077 = shalt.err (!%p3074_p12)
}
0x144d   : > { %p4340_p6 = pmov %p4339_p0  ;;  %s3078_s2 = scalar_lea.vmem %s2160_s7, 128 }
0x144e   : > { %p3079_p7 = scmp.ne.s32.totalorder %s2160_s7, %s3078_s2  ;;  %p4341_p9 = pmov %p4339_p0 }
0x144f   : > { %2637 = dma.vmem_to_hbm [thread:$0]  (%p4340_p6), %s2149_s0, 128, %s4338_s1, [#allocation17]  }
0x1450   : > { %p3080_p10 = pnand %p3079_p7, %p4341_p9  ;;  %p3085_p1 = scmp.lt.s32.totalorder %s2160_s7, %s2160_s7 }
0x1451   : > { %p3086_p3 = scmp.lt.s32.totalorder %s3078_s2, %s3078_s2 }
0x1452   : > { %p3081_p2 = pneg %p3080_p10 }
0x1453   : > { %p3087_p13 = por %p3086_p3, %p3085_p1 }
0x1455   : > { %p3088_p11 = pnand %p3087_p13, %p3081_p2 }
0x1457   : > { %3091 = shalt.err (!%p3088_p11)
}
0x1458   : > { %s4342_s8 = sld [smem:[#allocation38_spill]]  ;;  %p4343_p4 = pmov %p4340_p6 }
0x145e   : > { %s3092_s13 = scalar_lea.hbm %s4342_s8, 128 }
0x145f   : > { %p3093_p0 = scmp.ne.s32.totalorder %s4342_s8, %s3092_s13  ;;  %p3098_p12 = scmp.lt.u32.totalorder %s3092_s13, %s4342_s8 }
0x1461   : > { %p3094_p5 = pnand %p3093_p0, %p4343_p4 }
0x1463   : > { %p3095_p8 = pneg %p3094_p5 }
0x1465   : > { %p3100_p6 = pnand %p3098_p12, %p3095_p8 }
0x1467   : > { %3103 = shalt.err (!%p3100_p6)
}
0x1468   : > { %p4344_p7 = pmov %p4343_p4  ;;  %p4345_p9 = pmov %p4343_p4 }
0x146a   : > { %2639 = dma.vmem_to_hbm [thread:$0]  (%p4344_p7), %s2160_s7, 128, %s4342_s8, [#allocation20]  }
0x146b   : > { %3149 = dma.done.wait (%p4345_p9), [#allocation17], 128   ;;  %p4346_p10 = pmov %p4343_p4 }
0x146c   : > { %p4347_p2 = pmov %p4343_p4 }
0x146d   : > { %3151 = vsyncadd (%p4346_p10), [#allocation17], 4294967168 }
0x146e   : > { %3153 = dma.done.wait (%p4347_p2), [#allocation20], 128   ;;  %p4348_p1 = pmov %p4347_p2 }
0x1470   : > { %3155 = vsyncadd (%p4348_p1), [#allocation20], 4294967168 }
0x1471 PF: > { %s4349_s29 = sld [smem:[#allocation29_spill]]  ;;  %s4350_s9 = sld [smem:[#allocation30_spill]] }
0x1472   : > { %p4352_p13 = scmp.ge.s32.totalorder %s3190_s19, 2 }
0x1477   : > { %s2179_s30 = sand.u32 1, %s4349_s29   ;;  %p4351_p3 = scmp.ne.s32.totalorder %s4350_s9, 0 }
0x1478   : > { %s2180_s7 = scalar_lea.sflag [#allocation8], %s2179_s30 }
0x1479   : > { %p2664_p11 = pnand %p4352_p13, %p4351_p3 }
0x147b   : > { %3157 = dma.done.wait (!%p2664_p11), %s2180_s7, 1024  }
0x147c   : > { %3159 = vsyncadd (!%p2664_p11), %s2180_s7, 4294966272  ;;  %s4353_s2 = sadd.s32 4294967294, %s3190_s19   ;;  %s4354_s27 = sld [smem:[#allocation31_spill]] }
0x147d   : > { %s2188_s22 = sand.u32 1, %s4353_s2   ;;  %p4356_p4 = pmov %p4352_p13 }
0x147e   : > { %s2189_s20 = scalar_lea.sflag [#allocation17], %s2188_s22 }
0x1482   : > { %p4355_p0 = scmp.ne.s32.totalorder %s4354_s27, 0 }
0x1484   : > { %p2667_p5 = pnand %p4356_p4, %p4355_p0 }
0x1486   : > { %3161 = dma.done.wait (!%p2667_p5), %s2189_s20, 1024  }
0x1487   : > { %3163 = vsyncadd (!%p2667_p5), %s2189_s20, 4294966272  ;;  %p32_p8 = scmp.ge.s32.totalorder %s3497_s28, 4   ;;  %s4357_s13 = smov %s3170_s14 }
0x1488   : > { %s4358_s14 = smov %s3174_s15  ;;  %s4359_s15 = smov %s3521_s21 }
0x1489   : > { %s4360_s16 = smov %s3182_s17  ;;  %s4361_s17 = smov %s3186_s18 }
0x148a   : > { %s4362_s18 = smov %s3507_s25  ;;  %s4363_s19 = smov %s3497_s28 }
0x148b   :  { %34 = sbr.rel (!%p32_p8) target bundleno = 21 (0x15), region = 187 }
0x1492   :  { %2194 = vsyncpa [#allocation7], 1 }
0x1493   :  { %2196 = vsyncpa [#allocation7 + $0x1], 1 }
0x1494   :  { %2197 = vsyncpa [#allocation10], 1 }
0x1495   :  { %2199 = vsyncpa [#allocation10 + $0x1], 1 }
0x1496   :  { %2200 = vsyncpa [#allocation13], 1 }
0x1497   :  { %2201 = vsyncpa [#allocation8], 1 }
0x1498   :  { %2203 = vsyncpa [#allocation8 + $0x1], 1 }
0x1499   :  { %2204 = vsyncpa [#allocation17], 1 }
0x149a   :  { %2206 = vsyncpa [#allocation17 + $0x1], 1 }
0x149b   :  { %2207 = vsyncpa [#allocation20], 1 }

</bundles_post_ra>
